<compile_context>
chip_gen: v6e
topology: v6e:2x2x1
jax: 0.10.0
libtpu: 0.0.40
codegen_flags: <defaults>
</compile_context>

<pallas_src>
import functools

import jax
import jax.numpy as jnp
from jax.experimental import pallas as pl
from jax.experimental.pallas import tpu as pltpu

LANE = 128  # padded lane width for feature / embedding / target dims


# ----------------------------- Pallas kernel ------------------------------ #
def graphsage_kernel(A_ref, x_ref, w_ref, b_ref, out_ref, *,
                     graphs_per_block, nodes_per_graph):
    E = LANE
    A = A_ref[0]                      # (N, N)  bf16, row-normalized band
    x = x_ref[0]                      # (N, E)  bf16, zero-padded features

    # Packed weight slab (all bf16, lane width 128); static, aligned slices.
    wl0 = w_ref[0 * E:1 * E, :]       # layer-0 lin_l
    wr0 = w_ref[1 * E:2 * E, :]       # layer-0 lin_r
    wl1 = w_ref[2 * E:3 * E, :]       # layer-1 lin_l
    wr1 = w_ref[3 * E:4 * E, :]       # layer-1 lin_r
    fc1w = w_ref[4 * E:6 * E, :]      # fc1 merged: rows 0:E for p0, E:2E for p1
    fc2w = w_ref[6 * E:7 * E, :]      # fc2
    bl0 = b_ref[0:1, :]
    bl1 = b_ref[1:2, :]
    fc1b = b_ref[2:3, :]
    fc2b = b_ref[3:4, :]

    # ---- SAGE layer 0: h0 = (A @ x) @ Wl0 + x @ Wr0 + b0 ----
    agg0 = jnp.dot(A, x, preferred_element_type=jnp.float32)            # (N, E)
    h0 = (jnp.dot(agg0.astype(jnp.bfloat16), wl0,
                  preferred_element_type=jnp.float32)
          + jnp.dot(x, wr0, preferred_element_type=jnp.float32)
          + bl0)                                                        # f32

    G, P = graphs_per_block, nodes_per_graph
    # Pool layer-0 output immediately (segment max over contiguous graphs),
    # then keep only the bf16 copy of h0 live through layer 1.
    p0 = jnp.max(h0.reshape(G, P, E), axis=1)                           # (G, E)
    h0b = h0.astype(jnp.bfloat16)

    # ---- SAGE layer 1 ----
    agg1 = jnp.dot(A, h0b, preferred_element_type=jnp.float32)
    h1 = (jnp.dot(agg1.astype(jnp.bfloat16), wl1,
                  preferred_element_type=jnp.float32)
          + jnp.dot(h0b, wr1, preferred_element_type=jnp.float32)
          + bl1)
    p1 = jnp.max(h1.reshape(G, P, E), axis=1)                           # (G, E)

    # ---- head: fc1([p0 | p1]) -> relu -> fc2 ----
    pcat = jnp.concatenate([p0, p1], axis=1).astype(jnp.bfloat16)       # (G, 2E)
    z = jnp.maximum(
        jnp.dot(pcat, fc1w, preferred_element_type=jnp.float32) + fc1b, 0.0)
    out = (jnp.dot(z.astype(jnp.bfloat16), fc2w,
                   preferred_element_type=jnp.float32) + fc2b)          # (G, E)
    out_ref[0] = out


# ------------------------------- wrapper ----------------------------------- #
def _pad_to(a, shape):
    out = jnp.zeros(shape, a.dtype)
    return out.at[tuple(slice(0, s) for s in a.shape)].set(a)


@functools.partial(jax.jit, static_argnames=("graphs_per_block",
                                             "nodes_per_graph", "dim_target"))
def graphsage_forward(A_blocks, x_blocks, params, *, graphs_per_block,
                      nodes_per_graph, dim_target):
    (wl0, bl0, wr0, wl1, bl1, wr1, fc1w, fc1b, fc2w, fc2b) = params
    B, N, F = x_blocks.shape
    E = wl0.shape[1]
    T = dim_target
    assert F <= LANE and E <= LANE and T <= LANE
    assert N == graphs_per_block * nodes_per_graph

    # Lane-dense, zero-padded MXU operands in bf16.
    A_bf = A_blocks.astype(jnp.bfloat16)                        # (B, N, N)
    x_p = _pad_to(x_blocks, (B, N, LANE)).astype(jnp.bfloat16)  # (B, N, 128)

    # Single packed weight slab (7*128, 128) bf16.
    W = jnp.zeros((7 * LANE, LANE), jnp.float32)
    W = W.at[0 * LANE:0 * LANE + F, :E].set(wl0)
    W = W.at[1 * LANE:1 * LANE + F, :E].set(wr0)
    W = W.at[2 * LANE:2 * LANE + E, :E].set(wl1)
    W = W.at[3 * LANE:3 * LANE + E, :E].set(wr1)
    W = W.at[4 * LANE:4 * LANE + E, :E].set(fc1w[:E])           # fc1 rows for p0
    W = W.at[5 * LANE:5 * LANE + E, :E].set(fc1w[E:])           # fc1 rows for p1
    W = W.at[6 * LANE:6 * LANE + E, :T].set(fc2w)
    W = W.astype(jnp.bfloat16)

    # Single packed bias slab (8, 128) f32.
    Bias = jnp.zeros((8, LANE), jnp.float32)
    Bias = Bias.at[0, :E].set(bl0[0])
    Bias = Bias.at[1, :E].set(bl1[0])
    Bias = Bias.at[2, :E].set(fc1b[0])
    Bias = Bias.at[3, :T].set(fc2b[0])

    kernel = functools.partial(graphsage_kernel,
                               graphs_per_block=graphs_per_block,
                               nodes_per_graph=nodes_per_graph)
    out = pl.pallas_call(
        kernel,
        out_shape=jax.ShapeDtypeStruct((B, graphs_per_block, LANE), jnp.float32),
        grid=(B,),
        in_specs=[
            pl.BlockSpec((1, N, N), lambda b: (b, 0, 0)),       # A band (per step)
            pl.BlockSpec((1, N, LANE), lambda b: (b, 0, 0)),    # x band (per step)
            pl.BlockSpec((7 * LANE, LANE), lambda b: (0, 0)),   # weights (resident)
            pl.BlockSpec((8, LANE), lambda b: (0, 0)),          # biases (resident)
        ],
        out_specs=pl.BlockSpec((1, graphs_per_block, LANE), lambda b: (b, 0, 0)),
        compiler_params=pltpu.CompilerParams(
            dimension_semantics=("parallel",)),
    )(A_bf, x_p, W, Bias)

    return out[:, :, :T].reshape(B * graphs_per_block, T)


# --------------------------- plain-JAX reference --------------------------- #
def graphsage_ref(A_blocks, x_blocks, params, graphs_per_block, nodes_per_graph):
    (wl0, bl0, wr0, wl1, bl1, wr1, fc1w, fc1b, fc2w, fc2b) = params

    def layer(h, wl, bl, wr):
        agg = jnp.einsum('bij,bjf->bif', A_blocks, h)
        return agg @ wl + bl + h @ wr

    h0 = layer(x_blocks, wl0, bl0, wr0)
    h1 = layer(h0, wl1, bl1, wr1)
    h = jnp.concatenate([h0, h1], axis=-1)                      # (B, N, 2E)
    B, N, D = h.shape
    pooled = jnp.max(h.reshape(B, graphs_per_block, nodes_per_graph, D), axis=2)
    z = jnp.maximum(pooled @ fc1w + fc1b, 0.0)
    out = z @ fc2w + fc2b
    return out.reshape(B * graphs_per_block, -1)


# --------------------------------- main ------------------------------------ #
if __name__ == "__main__":
    # config: num_layers=2, dim_embedding=32, aggregation='mean'
    num_layers = 2
    dim_features = 16
    dim_embedding = 32
    dim_target = 8

    nodes_per_graph = 16
    graphs_per_block = 16            # 16 graphs x 16 nodes = 256-node MXU band
    N_blk = graphs_per_block * nodes_per_graph
    B = 4                            # graph-batches per pallas_call (grid steps)

    key = jax.random.PRNGKey(0)
    keys = jax.random.split(key, 12)

    # Node features per band.
    x_blocks = jax.random.normal(keys[0], (B, N_blk, dim_features), jnp.float32)

    # Deterministic undirected ring inside each 16-node graph of a band.
    src, dst = [], []
    for g in range(graphs_per_block):
        base = g * nodes_per_graph
        for k in range(nodes_per_graph):
            a = base + k
            b = base + (k + 1) % nodes_per_graph
            src += [a, b]
            dst += [b, a]
    edge_index = jnp.array([src, dst], dtype=jnp.int32)

    # Dense row-normalized band adjacency: A[i, j] = 1/deg(i) for edge j->i.
    A = jnp.zeros((N_blk, N_blk), jnp.float32).at[edge_index[1], edge_index[0]].add(1.0)
    deg = jnp.sum(A, axis=1, keepdims=True)
    A_band = A / jnp.maximum(deg, 1.0)
    A_blocks = jnp.tile(A_band[None], (B, 1, 1))    # same topology in every band

    # Parameters (Linear stored as [in, out]; SAGEConv lin_r has no bias).
    s = 0.1
    wl0 = s * jax.random.normal(keys[1], (dim_features, dim_embedding), jnp.float32)
    bl0 = s * jax.random.normal(keys[2], (1, dim_embedding), jnp.float32)
    wr0 = s * jax.random.normal(keys[3], (dim_features, dim_embedding), jnp.float32)
    wl1 = s * jax.random.normal(keys[4], (dim_embedding, dim_embedding), jnp.float32)
    bl1 = s * jax.random.normal(keys[5], (1, dim_embedding), jnp.float32)
    wr1 = s * jax.random.normal(keys[6], (dim_embedding, dim_embedding), jnp.float32)
    fc1w = s * jax.random.normal(keys[7], (num_layers * dim_embedding, dim_embedding), jnp.float32)
    fc1b = s * jax.random.normal(keys[8], (1, dim_embedding), jnp.float32)
    fc2w = s * jax.random.normal(keys[9], (dim_embedding, dim_target), jnp.float32)
    fc2b = s * jax.random.normal(keys[10], (1, dim_target), jnp.float32)
    params = (wl0, bl0, wr0, wl1, bl1, wr1, fc1w, fc1b, fc2w, fc2b)

    out = graphsage_forward(A_blocks, x_blocks, params,
                            graphs_per_block=graphs_per_block,
                            nodes_per_graph=nodes_per_graph,
                            dim_target=dim_target)
    out = jax.block_until_ready(out)

    ref = graphsage_ref(A_blocks, x_blocks, params,
                        graphs_per_block, nodes_per_graph)
    assert out.shape == (B * graphs_per_block, dim_target)
    err = float(jnp.max(jnp.abs(out - ref)))
    assert jnp.allclose(out, ref, rtol=2e-2, atol=2e-2), err

    print("KERNEL_OK")
</pallas_src>

<mosaic_0001>
module attributes {stable_mosaic.version = 11 : i64} {
  func.func @graphsage_kernel(%arg0: i32, %arg1: memref<1x256x256xbf16, #tpu.memory_space<vmem>>, %arg2: memref<1x256x128xbf16, #tpu.memory_space<vmem>>, %arg3: memref<896x128xbf16, #tpu.memory_space<vmem>>, %arg4: memref<8x128xf32, #tpu.memory_space<vmem>>, %arg5: memref<1x16x128xf32, #tpu.memory_space<vmem>>) attributes {dimension_semantics = [#tpu.dimension_semantics<parallel>], iteration_bounds = array<i64: 4>, scalar_prefetch = 0 : i64, scratch_operands = 0 : i64, tpu.core_type = #tpu.core_type<tc>, window_params = [{transform_indices = @transform_0, window_bounds = array<i64: 1, 256, 256>}, {transform_indices = @transform_1, window_bounds = array<i64: 1, 256, 128>}, {pipeline_mode = #tpu.pipeline_mode<synchronous>, transform_indices = @transform_2, window_bounds = array<i64: 896, 128>}, {pipeline_mode = #tpu.pipeline_mode<synchronous>, transform_indices = @transform_3, window_bounds = array<i64: 8, 128>}, {transform_indices = @transform_4, window_bounds = array<i64: 1, 16, 128>}]} {
    %c0 = arith.constant 0 : index
    %c0_0 = arith.constant 0 : index
    %c0_1 = arith.constant 0 : index
    %0 = vector.load %arg1[%c0, %c0_0, %c0_1] : memref<1x256x256xbf16, #tpu.memory_space<vmem>>, vector<1x256x256xbf16>
    %1 = vector.shape_cast %0 : vector<1x256x256xbf16> to vector<256x256xbf16>
    %c0_2 = arith.constant 0 : index
    %c0_3 = arith.constant 0 : index
    %c0_4 = arith.constant 0 : index
    %2 = vector.load %arg2[%c0_2, %c0_3, %c0_4] : memref<1x256x128xbf16, #tpu.memory_space<vmem>>, vector<1x256x128xbf16>
    %3 = vector.shape_cast %2 : vector<1x256x128xbf16> to vector<256x128xbf16>
    %c0_5 = arith.constant 0 : index
    %c0_6 = arith.constant 0 : index
    %4 = vector.load %arg3[%c0_5, %c0_6] : memref<896x128xbf16, #tpu.memory_space<vmem>>, vector<128x128xbf16>
    %c128 = arith.constant 128 : index
    %c0_7 = arith.constant 0 : index
    %5 = vector.load %arg3[%c128, %c0_7] : memref<896x128xbf16, #tpu.memory_space<vmem>>, vector<128x128xbf16>
    %c256 = arith.constant 256 : index
    %c0_8 = arith.constant 0 : index
    %6 = vector.load %arg3[%c256, %c0_8] : memref<896x128xbf16, #tpu.memory_space<vmem>>, vector<128x128xbf16>
    %c384 = arith.constant 384 : index
    %c0_9 = arith.constant 0 : index
    %7 = vector.load %arg3[%c384, %c0_9] : memref<896x128xbf16, #tpu.memory_space<vmem>>, vector<128x128xbf16>
    %c512 = arith.constant 512 : index
    %c0_10 = arith.constant 0 : index
    %8 = vector.load %arg3[%c512, %c0_10] : memref<896x128xbf16, #tpu.memory_space<vmem>>, vector<256x128xbf16>
    %c768 = arith.constant 768 : index
    %c0_11 = arith.constant 0 : index
    %9 = vector.load %arg3[%c768, %c0_11] : memref<896x128xbf16, #tpu.memory_space<vmem>>, vector<128x128xbf16>
    %c0_12 = arith.constant 0 : index
    %c0_13 = arith.constant 0 : index
    %10 = vector.load %arg4[%c0_12, %c0_13] : memref<8x128xf32, #tpu.memory_space<vmem>>, vector<1x128xf32>
    %c1 = arith.constant 1 : index
    %c0_14 = arith.constant 0 : index
    %11 = vector.load %arg4[%c1, %c0_14] : memref<8x128xf32, #tpu.memory_space<vmem>>, vector<1x128xf32>
    %c2 = arith.constant 2 : index
    %c0_15 = arith.constant 0 : index
    %12 = vector.load %arg4[%c2, %c0_15] : memref<8x128xf32, #tpu.memory_space<vmem>>, vector<1x128xf32>
    %c3 = arith.constant 3 : index
    %c0_16 = arith.constant 0 : index
    %13 = vector.load %arg4[%c3, %c0_16] : memref<8x128xf32, #tpu.memory_space<vmem>>, vector<1x128xf32>
    %cst = arith.constant dense<0.000000e+00> : vector<256x128xf32>
    %14 = tpu.matmul %1, %3, %cst {dimension_numbers = #tpu.dot_dimension_numbers<[1], [0], [0], [1], [0, 0, 1, 1], [], []>} : vector<256x256xbf16>, vector<256x128xbf16>, vector<256x128xf32> -> vector<256x128xf32>
    %15 = arith.truncf %14 : vector<256x128xf32> to vector<256x128xbf16>
    %cst_17 = arith.constant dense<0.000000e+00> : vector<256x128xf32>
    %16 = tpu.matmul %15, %4, %cst_17 {dimension_numbers = #tpu.dot_dimension_numbers<[1], [0], [0], [1], [0, 0, 1, 1], [], []>} : vector<256x128xbf16>, vector<128x128xbf16>, vector<256x128xf32> -> vector<256x128xf32>
    %cst_18 = arith.constant dense<0.000000e+00> : vector<256x128xf32>
    %17 = tpu.matmul %3, %5, %cst_18 {dimension_numbers = #tpu.dot_dimension_numbers<[1], [0], [0], [1], [0, 0, 1, 1], [], []>} : vector<256x128xbf16>, vector<128x128xbf16>, vector<256x128xf32> -> vector<256x128xf32>
    %18 = arith.addf %16, %17 : vector<256x128xf32>
    %19 = vector.broadcast %10 : vector<1x128xf32> to vector<256x128xf32>
    %20 = arith.addf %18, %19 : vector<256x128xf32>
    %21 = vector.shape_cast %20 : vector<256x128xf32> to vector<16x16x128xf32>
    %cst_19 = arith.constant dense<0xFF800000> : vector<16x128xf32>
    %22 = vector.multi_reduction <maximumf>, %21, %cst_19 [1] : vector<16x16x128xf32> to vector<16x128xf32>
    %23 = arith.truncf %20 : vector<256x128xf32> to vector<256x128xbf16>
    %cst_20 = arith.constant dense<0.000000e+00> : vector<256x128xf32>
    %24 = tpu.matmul %1, %23, %cst_20 {dimension_numbers = #tpu.dot_dimension_numbers<[1], [0], [0], [1], [0, 0, 1, 1], [], []>} : vector<256x256xbf16>, vector<256x128xbf16>, vector<256x128xf32> -> vector<256x128xf32>
    %25 = arith.truncf %24 : vector<256x128xf32> to vector<256x128xbf16>
    %cst_21 = arith.constant dense<0.000000e+00> : vector<256x128xf32>
    %26 = tpu.matmul %25, %6, %cst_21 {dimension_numbers = #tpu.dot_dimension_numbers<[1], [0], [0], [1], [0, 0, 1, 1], [], []>} : vector<256x128xbf16>, vector<128x128xbf16>, vector<256x128xf32> -> vector<256x128xf32>
    %cst_22 = arith.constant dense<0.000000e+00> : vector<256x128xf32>
    %27 = tpu.matmul %23, %7, %cst_22 {dimension_numbers = #tpu.dot_dimension_numbers<[1], [0], [0], [1], [0, 0, 1, 1], [], []>} : vector<256x128xbf16>, vector<128x128xbf16>, vector<256x128xf32> -> vector<256x128xf32>
    %28 = arith.addf %26, %27 : vector<256x128xf32>
    %29 = vector.broadcast %11 : vector<1x128xf32> to vector<256x128xf32>
    %30 = arith.addf %28, %29 : vector<256x128xf32>
    %31 = vector.shape_cast %30 : vector<256x128xf32> to vector<16x16x128xf32>
    %cst_23 = arith.constant dense<0xFF800000> : vector<16x128xf32>
    %32 = vector.multi_reduction <maximumf>, %31, %cst_23 [1] : vector<16x16x128xf32> to vector<16x128xf32>
    %33 = tpu.concatenate %22, %32 in 1 : vector<16x128xf32>, vector<16x128xf32> -> vector<16x256xf32>
    %34 = arith.truncf %33 : vector<16x256xf32> to vector<16x256xbf16>
    %cst_24 = arith.constant dense<0.000000e+00> : vector<16x128xf32>
    %35 = tpu.matmul %34, %8, %cst_24 {dimension_numbers = #tpu.dot_dimension_numbers<[1], [0], [0], [1], [0, 0, 1, 1], [], []>} : vector<16x256xbf16>, vector<256x128xbf16>, vector<16x128xf32> -> vector<16x128xf32>
    %36 = vector.broadcast %12 : vector<1x128xf32> to vector<16x128xf32>
    %37 = arith.addf %35, %36 : vector<16x128xf32>
    %cst_25 = arith.constant 0.000000e+00 : f32
    %38 = vector.broadcast %cst_25 : f32 to vector<16x128xf32>
    %39 = arith.maximumf %37, %38 : vector<16x128xf32>
    %40 = arith.truncf %39 : vector<16x128xf32> to vector<16x128xbf16>
    %cst_26 = arith.constant dense<0.000000e+00> : vector<16x128xf32>
    %41 = tpu.matmul %40, %9, %cst_26 {dimension_numbers = #tpu.dot_dimension_numbers<[1], [0], [0], [1], [0, 0, 1, 1], [], []>} : vector<16x128xbf16>, vector<128x128xbf16>, vector<16x128xf32> -> vector<16x128xf32>
    %42 = vector.broadcast %13 : vector<1x128xf32> to vector<16x128xf32>
    %43 = arith.addf %41, %42 : vector<16x128xf32>
    %c0_27 = arith.constant 0 : index
    %c0_28 = arith.constant 0 : index
    %c0_29 = arith.constant 0 : index
    %44 = vector.load %arg5[%c0_27, %c0_28, %c0_29] : memref<1x16x128xf32, #tpu.memory_space<vmem>>, vector<1x16x128xf32>
    %45 = vector.shape_cast %44 : vector<1x16x128xf32> to vector<16x128xf32>
    %46 = vector.shape_cast %43 : vector<16x128xf32> to vector<1x16x128xf32>
    tpu.vector_store %arg5[%c0_27, %c0_28, %c0_29], %46 {strides = array<i32>} : memref<1x16x128xf32, #tpu.memory_space<vmem>>, vector<1x16x128xf32>,
    return
  }
  func.func @transform_0(%arg0: i32) -> (i32, i32, i32) {
    %c0_i32 = arith.constant 0 : i32
    %c0_i32_0 = arith.constant 0 : i32
    %c0_i32_1 = arith.constant 0 : i32
    return %arg0, %c0_i32, %c0_i32_0 : i32, i32, i32
  }
  func.func @transform_1(%arg0: i32) -> (i32, i32, i32) {
    %c0_i32 = arith.constant 0 : i32
    %c0_i32_0 = arith.constant 0 : i32
    %c0_i32_1 = arith.constant 0 : i32
    return %arg0, %c0_i32, %c0_i32_0 : i32, i32, i32
  }
  func.func @transform_2(%arg0: i32) -> (i32, i32) {
    %c0_i32 = arith.constant 0 : i32
    %c0_i32_0 = arith.constant 0 : i32
    %c0_i32_1 = arith.constant 0 : i32
    return %c0_i32, %c0_i32_0 : i32, i32
  }
  func.func @transform_3(%arg0: i32) -> (i32, i32) {
    %c0_i32 = arith.constant 0 : i32
    %c0_i32_0 = arith.constant 0 : i32
    %c0_i32_1 = arith.constant 0 : i32
    return %c0_i32, %c0_i32_0 : i32, i32
  }
  func.func @transform_4(%arg0: i32) -> (i32, i32, i32) {
    %c0_i32 = arith.constant 0 : i32
    %c0_i32_0 = arith.constant 0 : i32
    %c0_i32_1 = arith.constant 0 : i32
    return %arg0, %c0_i32, %c0_i32_0 : i32, i32, i32
  }
}

</mosaic_0001>

<bundles_post_ra>
// kernel: graphsage_forward.1
= control target key start
LH: loop header
LB: loop body
LE: loop exit
PB: predicated region body
PF: predicated region fallthrough
CT: control target
= control target key end

     0   :  { %s3419_s15 = smov 0   ;;  %s4137_s0 = inlined_call_operand.vmem [shape: bf16[4,256,256], index: 0, kind: input, shape index: {}]   ;;  %s4138_s1 = inlined_call_operand.vmem [shape: bf16[4,256,128], index: 1, kind: input, shape index: {}]   ;;  %s4139_s2 = inlined_call_operand.vmem [shape: bf16[896,128], index: 2, kind: input, shape index: {}]   ;;  %s4140_s3 = inlined_call_operand.vmem [shape: f32[8,128], index: 3, kind: input, shape index: {}]   ;;  %s4141_s4 = inlined_call_operand.vmem [shape: f32[4,16,128], index: 4, kind: output, shape index: {}]  }
   0x1 LB: > { %s2536_s16 = sadd.s32 4294967295, %s3390_s15   ;;  %p2540_p0 = scmp.ge.s32.totalorder %s3390_s15, 1  ;;  %s3390_s15 = sphi %s3419_s15, %s14_s15  }
   0x2   : > { %p172_p1 = scmp.lt.s32.totalorder %s3390_s15, 5 }
   0x4   : > { %p173_p2 = pnand %p2540_p0, %p172_p1 }
   0x6   : > { %176 = sbr.rel (%p173_p2) target bundleno = 1559 (0x617), region = 36 }
   0xb   : > { %p203_p3 = scmp.lt.s32.totalorder %s2536_s16, 3  ;;  %v3294_v19 = vld [vmem:[%s4139_s2 + $0x78] sm:$0xff]   ;;  %v3295_v20 = vld [vmem:[%s4139_s2 + $0x70] sm:$0xff]   ;;  %v3299_v23 = vld [vmem:[%s4139_s2 + $0x68] sm:$0xff]   ;;  %vm2173_vm0 = vcmask 1041409   ;;  %vm2175_vm1 = vcmask 1042434  }
   0xc   : > { %3011 = vmatprep.subr.bf16.mxu1 %v3294_v19  ;;  %v3300_v25 = vld [vmem:[%s4139_s2 + $0x60] sm:$0xff]   ;;  %v3301_v27 = vld [vmem:[%s4139_s2 + $0x58] sm:$0xff]   ;;  %v3302_v28 = vld [vmem:[%s4139_s2 + $0x50] sm:$0xff]   ;;  %vm2177_vm2 = vcmask 1043459   ;;  %vm2179_vm3 = vcmask 1044484   ;;  %vm2181_vm4 = vcmask 1045509  }
   0xd   : > { %s4153_s16 = smov (!%p203_p3, %s2536_s16), 3  ;;  %3012 = vmatpush3.bf16.msra.mxu1 %v3294_v19  ;;  %v3303_v31 = vld [vmem:[%s4139_s2 + $0x48] sm:$0xff]   ;;  %v3304_v32 = vld [vmem:[%s4139_s2 + $0x40] sm:$0xff]   ;;  %v3305_v35 = vld [vmem:[%s4139_s2 + $0x38] sm:$0xff]   ;;  %vm2183_vm5 = vcmask 1046534   ;;  %vm2185_vm6 = vcmask 1047559  }
   0xe   : > { %s2658_s17 = sshll.u32 %s4153_s16, 7  ;;  %s2657_s21 = sshll.u32 %s4153_s16, 8  ;;  %3013 = vmatprep.subr.bf16.mxu1 %v3295_v20  ;;  %v3306_v36 = vld [vmem:[%s4139_s2 + $0x30] sm:$0xff]   ;;  %v3307_v39 = vld [vmem:[%s4139_s2 + $0x28] sm:$0xff]   ;;  %v3308_v40 = vld [vmem:[%s4139_s2 + $0x20] sm:$0xff]   ;;  %vm3393_vm7 = vmmov 0  }
   0xf   : > { %s3433_s20 = scalar_lea.vmem %s4138_s1, %s2658_s17  ;;  %s3476_s24 = scalar_lea.vmem %s4137_s0, %s2657_s21  ;;  %v3309_v47 = vld [vmem:[%s4139_s2 + $0x18] sm:$0xff]   ;;  %v3310_v50 = vld [vmem:[%s4139_s2 + $0x10] sm:$0xff]   ;;  %v3311_v51 = vld [vmem:[%s4139_s2 + $0x8] sm:$0xff]  }
  0x10   : > { %v3436_v0 = vld [vmem:[%s3433_s20 + $0x78] sm:$0xff]   ;;  %v3443_v2 = vld [vmem:[%s3433_s20 + $0x70] sm:$0xff]   ;;  %v3451_v4 = vld [vmem:[%s3433_s20 + $0x68] sm:$0xff]   ;;  %s2659_s25 = sshll.u32 %s4153_s16, 4 }
  0x11   : > { %v3439_v1 = vld [vmem:[%s3433_s20 + $0x38] sm:$0xff]   ;;  %2660 = vmatprep.subr.bf16.mxu0 %v3436_v0  ;;  %v3447_v3 = vld [vmem:[%s3433_s20 + $0x30] sm:$0xff]   ;;  %v3455_v5 = vld [vmem:[%s3433_s20 + $0x28] sm:$0xff]   ;;  %3014 = vmatpush3.bf16.msra.mxu1 %v3295_v20  ;;  %s217_s30 = scalar_lea.vmem %s4141_s4, %s2659_s25 }
  0x12   : > { %2661 = vmatpush3.bf16.msra.mxu0 %v3439_v1  ;;  %v3459_v6 = vld [vmem:[%s3433_s20 + $0x60] sm:$0xff]   ;;  %v3468_v8 = vld [vmem:[%s3433_s20 + $0x58] sm:$0xff]   ;;  %v3482_v11 = vld [vmem:[%s3433_s20 + $0x50] sm:$0xff]   ;;  %3015 = vmatprep.subr.bf16.mxu1 %v3299_v23 }
  0x13   : > { %2662 = vmatprep.subr.bf16.mxu0 %v3443_v2  ;;  %v3463_v7 = vld [vmem:[%s3433_s20 + $0x20] sm:$0xff]   ;;  %v3471_v9 = vld [vmem:[%s3433_s20 + $0x18] sm:$0xff]   ;;  %v3244_v13 = vld [vmem:[%s3433_s20 + $0x10] sm:$0xff]  }
  0x14   : > { %v3248_v10 = vld [vmem:[%s3433_s20] sm:$0xff]   ;;  %v3492_v14 = vld [vmem:[%s3433_s20 + $0x48] sm:$0xff]   ;;  %v3252_v18 = vld [vmem:[%s3476_s24 + $0x14] ss:$8 sps:$4 sm:$0xff]  }
  0x15   : > { %v3485_v12 = vld [vmem:[%s3476_s24 + $0x4] ss:$8 sps:$4 sm:$0xff]   ;;  %3027 = vmatprep.mubr.bf16.mxu1 %v3248_v10  ;;  %v3249_v17 = vld [vmem:[%s3476_s24] ss:$8 sps:$4 sm:$0xff]   ;;  %v3254_v21 = vld [vmem:[%s3476_s24 + $0x10] ss:$8 sps:$4 sm:$0xff]   ;;  %3016 = vmatpush3.bf16.msra.mxu1 %v3299_v23 }
  0x16   : > { %2663 = vmatpush3.bf16.msra.mxu0 %v3447_v3  ;;  %687 = vmatprep.mubr.bf16.mxu0 %v3485_v12  ;;  %v3246_v15 = vld [vmem:[%s3433_s20 + $0x8] sm:$0xff]   ;;  %v3497_v16 = vld [vmem:[%s3433_s20 + $0x40] sm:$0xff]   ;;  %v3258_v26 = vld [vmem:[%s3476_s24 + $0x34] ss:$8 sps:$4 sm:$0xff]  }
  0x17   : > { %2664 = vmatprep.subr.bf16.mxu0 %v3451_v4  ;;  %v3255_v22 = vld [vmem:[%s3476_s24 + $0x24] ss:$8 sps:$4 sm:$0xff]   ;;  %v3257_v24 = vld [vmem:[%s3476_s24 + $0x20] ss:$8 sps:$4 sm:$0xff]   ;;  %3017 = vmatprep.subr.bf16.mxu1 %v3300_v25  ;;  %v3260_v29 = vld [vmem:[%s3476_s24 + $0x30] ss:$8 sps:$4 sm:$0xff]  }
  0x18   : > { %v3261_v30 = vld [vmem:[%s3476_s24 + $0x44] ss:$8 sps:$4 sm:$0xff]   ;;  %v3263_v33 = vld [vmem:[%s3476_s24 + $0x40] ss:$8 sps:$4 sm:$0xff]   ;;  %v3264_v34 = vld [vmem:[%s3476_s24 + $0x54] ss:$8 sps:$4 sm:$0xff]  }
  0x19   : > { %3018 = vmatpush3.bf16.msra.mxu1 %v3300_v25  ;;  %v3266_v37 = vld [vmem:[%s3476_s24 + $0x50] ss:$8 sps:$4 sm:$0xff]   ;;  %v3267_v38 = vld [vmem:[%s3476_s24 + $0x64] ss:$8 sps:$4 sm:$0xff]   ;;  %v3269_v41 = vld [vmem:[%s3476_s24 + $0x60] ss:$8 sps:$4 sm:$0xff]  }
  0x1a   : > { %2665 = vmatpush3.bf16.msra.mxu0 %v3455_v5  ;;  %3019 = vmatprep.subr.bf16.mxu1 %v3301_v27  ;;  %v3270_v42 = vld [vmem:[%s3476_s24 + $0x74] ss:$8 sps:$4 sm:$0xff]   ;;  %v3272_v43 = vld [vmem:[%s3476_s24 + $0x70] ss:$8 sps:$4 sm:$0xff]   ;;  %v3273_v44 = vld [vmem:[%s3476_s24 + $0x84] ss:$8 sps:$4 sm:$0xff]  }
  0x1b   : > { %2666 = vmatprep.subr.bf16.mxu0 %v3459_v6  ;;  %v3275_v45 = vld [vmem:[%s3476_s24 + $0x80] ss:$8 sps:$4 sm:$0xff]   ;;  %v3276_v46 = vld [vmem:[%s3476_s24 + $0x94] ss:$8 sps:$4 sm:$0xff]   ;;  %v3278_v48 = vld [vmem:[%s3476_s24 + $0x90] ss:$8 sps:$4 sm:$0xff]  }
  0x1c   : > { %v3279_v49 = vld [vmem:[%s3476_s24 + $0xa4] ss:$8 sps:$4 sm:$0xff]   ;;  %v3281_v52 = vld [vmem:[%s3476_s24 + $0xa0] ss:$8 sps:$4 sm:$0xff]   ;;  %v3282_v53 = vld [vmem:[%s3476_s24 + $0xb4] ss:$8 sps:$4 sm:$0xff]  }
  0x1d   : > { %3020 = vmatpush3.bf16.msra.mxu1 %v3301_v27  ;;  %v3312_v54 = vld [vmem:[%s4139_s2] sm:$0xff]   ;;  %v3284_v55 = vld [vmem:[%s3476_s24 + $0xb0] ss:$8 sps:$4 sm:$0xff]   ;;  %v3288_v58 = vld [vmem:[%s3476_s24 + $0xd4] ss:$8 sps:$4 sm:$0xff]  }
  0x1e   : > { %2667 = vmatpush3.bf16.msra.mxu0 %v3463_v7  ;;  %3021 = vmatprep.subr.bf16.mxu1 %v3302_v28  ;;  %v3285_v56 = vld [vmem:[%s3476_s24 + $0xc4] ss:$8 sps:$4 sm:$0xff]   ;;  %v3287_v57 = vld [vmem:[%s3476_s24 + $0xc0] ss:$8 sps:$4 sm:$0xff]   ;;  %v3290_v59 = vld [vmem:[%s3476_s24 + $0xd0] ss:$8 sps:$4 sm:$0xff]  }
  0x1f   : > { %2668 = vmatprep.subr.bf16.mxu0 %v3468_v8  ;;  %v3291_v60 = vld [vmem:[%s3476_s24 + $0xe4] ss:$8 sps:$4 sm:$0xff]   ;;  %v3293_v61 = vld [vmem:[%s3476_s24 + $0xe0] ss:$8 sps:$4 sm:$0xff]   ;;  %v3296_v62 = vld [vmem:[%s3476_s24 + $0xf4] ss:$8 sps:$4 sm:$0xff]  }
  0x20   : > { %v3298_v63 = vld [vmem:[%s3476_s24 + $0xf0] ss:$8 sps:$4 sm:$0xff]   ;;  %v3315_v19 = vld [vmem:[%s4139_s2 + $0xe8] sm:$0xff]   ;;  %v3316_v25 = vld [vmem:[%s4139_s2 + $0xe0] sm:$0xff]  }
  0x21   : > { %3022 = vmatpush3.bf16.msra.mxu1 %v3302_v28  ;;  %v3317_v28 = vld [vmem:[%s4139_s2 + $0xd8] sm:$0xff]  }
  0x22   : > { %2669 = vmatpush3.bf16.msra.mxu0 %v3471_v9  ;;  %3023 = vmatprep.subr.bf16.mxu1 %v3303_v31 }
  0x23   : > { %2670 = vmatprep.subr.bf16.mxu0 %v3482_v11 }
  0x25   : > { %3024 = vmatpush3.bf16.msra.mxu1 %v3303_v31 }
  0x26   : > { %2671 = vmatpush3.bf16.msra.mxu0 %v3244_v13  ;;  %3025 = vmatprep.subr.bf16.mxu1 %v3304_v32 }
  0x27   : > { %2672 = vmatprep.subr.bf16.mxu0 %v3492_v14 }
  0x29   : > { %3026 = vmatpush3.bf16.msra.mxu1 %v3304_v32 }
  0x2a   : > { %2673 = vmatpush3.bf16.msra.mxu0 %v3246_v15  ;;  %3059 = vmatprep.subr.bf16.mxu1 %v3305_v35 }
  0x2b   : > { %2674 = vmatprep.subr.bf16.mxu0 %v3497_v16 }
  0x2c   : > { %3028 = vmatmul.mubr.bf16.vlgmr.msra.gmra.mxu1 %v3246_v15 }
  0x2d   : > { %3031 = vmatprep.mubr.bf16.mxu1 %v3244_v13  ;;  %3060 = vmatpush3.bf16.msra.mxu1 %v3305_v35 }
  0x2e   : > { %2675 = vmatpush3.bf16.msra.mxu0 %v3248_v10  ;;  %3061 = vmatprep.subr.bf16.mxu1 %v3306_v36 }
  0x31   : > { %688 = vmatmul.mubr.bf16.vlgmr.msra.gmra.mxu0 %v3249_v17  ;;  %3062 = vmatpush3.bf16.msra.mxu1 %v3306_v36 }
  0x32   : > { %695 = vmatprep.mubr.bf16.mxu0 %v3252_v18  ;;  %3063 = vmatprep.subr.bf16.mxu1 %v3307_v39 }
  0x34   : > { %3032 = vmatmul.mubr.bf16.gmra.mxu1 %v3471_v9 }
  0x35   : > { %3035 = vmatprep.mubr.bf16.mxu1 %v3463_v7  ;;  %3064 = vmatpush3.bf16.msra.mxu1 %v3307_v39 }
  0x36   : > { %3065 = vmatprep.subr.bf16.mxu1 %v3308_v40 }
  0x39   : > { %696 = vmatmul.mubr.bf16.gmra.mxu0 %v3254_v21  ;;  %3066 = vmatpush3.bf16.msra.mxu1 %v3308_v40 }
  0x3a   : > { %703 = vmatprep.mubr.bf16.mxu0 %v3255_v22  ;;  %3067 = vmatprep.subr.bf16.mxu1 %v3309_v47 }
  0x3c   : > { %3036 = vmatmul.mubr.bf16.gmra.mxu1 %v3455_v5 }
  0x3d   : > { %3039 = vmatprep.mubr.bf16.mxu1 %v3447_v3  ;;  %3068 = vmatpush3.bf16.msra.mxu1 %v3309_v47 }
  0x3e   : > { %3069 = vmatprep.subr.bf16.mxu1 %v3310_v50 }
  0x41   : > { %704 = vmatmul.mubr.bf16.gmra.mxu0 %v3257_v24  ;;  %3070 = vmatpush3.bf16.msra.mxu1 %v3310_v50 }
  0x42   : > { %711 = vmatprep.mubr.bf16.mxu0 %v3258_v26  ;;  %3071 = vmatprep.subr.bf16.mxu1 %v3311_v51 }
  0x44   : > { %3040 = vmatmul.mubr.bf16.gmra.mxu1 %v3439_v1 }
  0x45   : > { %3043 = vmatprep.mubr.bf16.mxu1 %v3497_v16  ;;  %3072 = vmatpush3.bf16.msra.mxu1 %v3311_v51  ;;  %v3314_v16 = vld [vmem:[%s4139_s2 + $0xf0] sm:$0xff]  }
  0x46   : > { %3073 = vmatprep.subr.bf16.mxu1 %v3312_v54 }
  0x49   : > { %712 = vmatmul.mubr.bf16.gmra.mxu0 %v3260_v29  ;;  %3074 = vmatpush3.bf16.msra.mxu1 %v3312_v54 }
  0x4a   : > { %719 = vmatprep.mubr.bf16.mxu0 %v3261_v30 }
  0x4c   : > { %3044 = vmatmul.mubr.bf16.gmra.mxu1 %v3492_v14 }
  0x4d   : > { %3047 = vmatprep.mubr.bf16.mxu1 %v3482_v11 }
  0x51   : > { %720 = vmatmul.mubr.bf16.gmra.mxu0 %v3263_v33 }
  0x52   : > { %727 = vmatprep.mubr.bf16.mxu0 %v3264_v34 }
  0x54   : > { %3048 = vmatmul.mubr.bf16.gmra.mxu1 %v3468_v8 }
  0x55   : > { %3051 = vmatprep.mubr.bf16.mxu1 %v3459_v6 }
  0x59   : > { %728 = vmatmul.mubr.bf16.gmra.mxu0 %v3266_v37 }
  0x5a   : > { %735 = vmatprep.mubr.bf16.mxu0 %v3267_v38 }
  0x5c   : > { %3052 = vmatmul.mubr.bf16.gmra.mxu1 %v3451_v4 }
  0x5d   : > { %3055 = vmatprep.mubr.bf16.mxu1 %v3443_v2 }
  0x61   : > { %736 = vmatmul.mubr.bf16.gmra.mxu0 %v3269_v41 }
  0x62   : > { %743 = vmatprep.mubr.bf16.mxu0 %v3270_v42 }
  0x64   : > { %3056 = vmatmul.mubr.bf16.gmra.mxu1 %v3436_v0  ;;  %v3313_v0 = vld [vmem:[%s4139_s2 + $0xf8] sm:$0xff]  }
  0x65   : > { %3107 = vmatprep.subr.bf16.mxu1 %v3313_v0 }
  0x69   : > { %744 = vmatmul.mubr.bf16.gmra.mxu0 %v3272_v43 }
  0x6a   : > { %751 = vmatprep.mubr.bf16.mxu0 %v3273_v44 }
  0x71   : > { %752 = vmatmul.mubr.bf16.gmra.mxu0 %v3275_v45 }
  0x72   : > { %759 = vmatprep.mubr.bf16.mxu0 %v3276_v46 }
  0x79   : > { %760 = vmatmul.mubr.bf16.gmra.mxu0 %v3278_v48 }
  0x7a   : > { %767 = vmatprep.mubr.bf16.mxu0 %v3279_v49 }
  0x81   : > { %768 = vmatmul.mubr.bf16.gmra.mxu0 %v3281_v52 }
  0x82   : > { %775 = vmatprep.mubr.bf16.mxu0 %v3282_v53 }
  0x89   : > { %776 = vmatmul.mubr.bf16.gmra.mxu0 %v3284_v55 }
  0x8a   : > { %783 = vmatprep.mubr.bf16.mxu0 %v3285_v56 }
  0x91   : > { %784 = vmatmul.mubr.bf16.gmra.mxu0 %v3287_v57 }
  0x92   : > { %791 = vmatprep.mubr.bf16.mxu0 %v3288_v58 }
  0x99   : > { %792 = vmatmul.mubr.bf16.gmra.mxu0 %v3290_v59 }
  0x9a   : > { %799 = vmatprep.mubr.bf16.mxu0 %v3291_v60 }
  0xa1   : > { %800 = vmatmul.mubr.bf16.gmra.mxu0 %v3293_v61 }
  0xa2   : > { %807 = vmatprep.mubr.bf16.mxu0 %v3296_v62 }
  0xa9   : > { %808 = vmatmul.mubr.bf16.gmra.mxu0 %v3298_v63 }
  0xaa   : > { %1446 = vmatprep.mubr.bf16.mxu0 %v3485_v12 }
  0xf1   : > { %v2676_v1 = vpop.f32.mrf.mxu0 }
  0xf3   : > { %v2677_v2 = vpop.f32.mrf.mxu0 }
  0xf4   : > { %v2678_v5 = vadd.f32 %v2677_v2, %v2676_v1 }
  0xf5   : > { %v2679_v3 = vpop.f32.mrf.mxu0 }
  0xf7   : > { %v2680_v4 = vpop.f32.mrf.mxu0 }
  0xf8   : > { %v2681_v6 = vadd.f32 %v2680_v4, %v2679_v3 }
  0xf9   : > { %v2682_v7 = vpop.f32.mrf.mxu0 }
  0xfa   : > { %v816_v8 = vpack.c.bf16 %v2681_v6, %v2678_v5 }
  0xfb   : > { %v2683_v9 = vpop.f32.mrf.mxu0 }
  0xfc   : > { %3075 = vmatprep.mubr.bf16.mxu1 %v816_v8  ;;  %v2684_v13 = vadd.f32 %v2683_v9, %v2682_v7 }
  0xfd   : > { %v2685_v10 = vpop.f32.mrf.mxu0 }
  0xff   : > { %v2686_v11 = vpop.f32.mrf.mxu0 }
 0x100   : > { %v2687_v14 = vadd.f32 %v2686_v11, %v2685_v10 }
 0x101   : > { %v2688_v12 = vpop.f32.mrf.mxu0 }
 0x102   : > { %v817_v15 = vpack.c.bf16 %v2687_v14, %v2684_v13  ;;  %v3608_v14 = vpop.f32.mrf.mxu1 }
 0x103   : > { %v2689_v17 = vpop.f32.mrf.mxu0 }
 0x104   : > { %3076 = vmatmul.mubr.bf16.vlgmr.msra.gmra.mxu1 %v817_v15  ;;  %v2690_v21 = vadd.f32 %v2689_v17, %v2688_v12  ;;  %v3318_v12 = vld [vmem:[%s4139_s2 + $0xd0] sm:$0xff]  }
 0x105   : > { %v2691_v18 = vpop.f32.mrf.mxu0  ;;  %3108 = vmatpush3.bf16.msra.mxu1 %v3313_v0 }
 0x106   : > { %3109 = vmatprep.subr.bf16.mxu1 %v3314_v16 }
 0x107   : > { %v2692_v20 = vpop.f32.mrf.mxu0 }
 0x108   : > { %v2693_v22 = vadd.f32 %v2692_v20, %v2691_v18  ;;  %v3319_v20 = vld [vmem:[%s4139_s2 + $0xc8] sm:$0xff]  }
 0x109   : > { %v2694_v23 = vpop.f32.mrf.mxu0  ;;  %3110 = vmatpush3.bf16.msra.mxu1 %v3314_v16 }
 0x10a   : > { %v818_v24 = vpack.c.bf16 %v2693_v22, %v2690_v21  ;;  %3111 = vmatprep.subr.bf16.mxu1 %v3315_v19 }
 0x10b   : > { %v2695_v26 = vpop.f32.mrf.mxu0 }
 0x10c   : > { %3079 = vmatprep.mubr.bf16.mxu1 %v818_v24  ;;  %v2696_v30 = vadd.f32 %v2695_v26, %v2694_v23 }
 0x10d   : > { %v2697_v27 = vpop.f32.mrf.mxu0  ;;  %3112 = vmatpush3.bf16.msra.mxu1 %v3315_v19  ;;  %v3613_v19 = vpop.f32.mrf.mxu1 }
 0x10e   : > { %3113 = vmatprep.subr.bf16.mxu1 %v3316_v25 }
 0x10f   : > { %v2698_v29 = vpop.f32.mrf.mxu0  ;;  %v3618_v24 = vpop.f32.mrf.mxu1 }
 0x110   : > { %v2699_v31 = vadd.f32 %v2698_v29, %v2697_v27 }
 0x111   : > { %v2700_v32 = vpop.f32.mrf.mxu0  ;;  %3114 = vmatpush3.bf16.msra.mxu1 %v3316_v25  ;;  %v3320_v25 = vld [vmem:[%s4139_s2 + $0xc0] sm:$0xff]  }
 0x112   : > { %v819_v33 = vpack.c.bf16 %v2699_v31, %v2696_v30  ;;  %3115 = vmatprep.subr.bf16.mxu1 %v3317_v28  ;;  %v3623_v30 = vpop.f32.mrf.mxu1 }
 0x113   : > { %v2701_v34 = vpop.f32.mrf.mxu0 }
 0x114   : > { %3080 = vmatmul.mubr.bf16.gmra.mxu1 %v819_v33  ;;  %v2702_v37 = vadd.f32 %v2701_v34, %v2700_v32  ;;  %v3625_v34 = vpop.f32.mrf.mxu1 }
 0x115   : > { %v2703_v35 = vpop.f32.mrf.mxu0  ;;  %3116 = vmatpush3.bf16.msra.mxu1 %v3317_v28 }
 0x116   : > { %3117 = vmatprep.subr.bf16.mxu1 %v3318_v12 }
 0x117   : > { %v2704_v36 = vpop.f32.mrf.mxu0 }
 0x118   : > { %v2705_v38 = vadd.f32 %v2704_v36, %v2703_v35 }
 0x119   : > { %v2706_v39 = vpop.f32.mrf.mxu0  ;;  %3118 = vmatpush3.bf16.msra.mxu1 %v3318_v12 }
 0x11a   : > { %v820_v40 = vpack.c.bf16 %v2705_v38, %v2702_v37  ;;  %3119 = vmatprep.subr.bf16.mxu1 %v3319_v20 }
 0x11b   : > { %v2707_v41 = vpop.f32.mrf.mxu0 }
 0x11c   : > { %3083 = vmatprep.mubr.bf16.mxu1 %v820_v40  ;;  %v2708_v44 = vadd.f32 %v2707_v41, %v2706_v39  ;;  %v3627_v39 = vpop.f32.mrf.mxu1 }
 0x11d   : > { %v2709_v42 = vpop.f32.mrf.mxu0  ;;  %3120 = vmatpush3.bf16.msra.mxu1 %v3319_v20 }
 0x11e   : > { %3121 = vmatprep.subr.bf16.mxu1 %v3320_v25 }
 0x11f   : > { %v2710_v43 = vpop.f32.mrf.mxu0 }
 0x120   : > { %v2711_v45 = vadd.f32 %v2710_v43, %v2709_v42  ;;  %v3629_v43 = vpop.f32.mrf.mxu1 }
 0x121   : > { %v2712_v46 = vpop.f32.mrf.mxu0  ;;  %3122 = vmatpush3.bf16.msra.mxu1 %v3320_v25 }
 0x122   : > { %v821_v47 = vpack.c.bf16 %v2711_v45, %v2708_v44 }
 0x123   : > { %v2713_v48 = vpop.f32.mrf.mxu0 }
 0x124   : > { %3084 = vmatmul.mubr.bf16.gmra.mxu1 %v821_v47  ;;  %v2714_v51 = vadd.f32 %v2713_v48, %v2712_v46  ;;  %v3631_v48 = vpop.f32.mrf.mxu1 }
 0x125   : > { %v2715_v49 = vpop.f32.mrf.mxu0 }
 0x127   : > { %v2716_v50 = vpop.f32.mrf.mxu0 }
 0x128   : > { %v2717_v52 = vadd.f32 %v2716_v50, %v2715_v49 }
 0x129   : > { %v2718_v53 = vpop.f32.mrf.mxu0 }
 0x12a   : > { %v822_v54 = vpack.c.bf16 %v2717_v52, %v2714_v51  ;;  %v3633_v52 = vpop.f32.mrf.mxu1 }
 0x12b   : > { %v2719_v55 = vpop.f32.mrf.mxu0 }
 0x12c   : > { %3087 = vmatprep.mubr.bf16.mxu1 %v822_v54  ;;  %v2720_v58 = vadd.f32 %v2719_v55, %v2718_v53 }
 0x12d   : > { %v2721_v56 = vpop.f32.mrf.mxu0 }
 0x12f   : > { %v2722_v57 = vpop.f32.mrf.mxu0 }
 0x130   : > { %v2723_v59 = vadd.f32 %v2722_v57, %v2721_v56  ;;  %v3635_v57 = vpop.f32.mrf.mxu1 }
 0x131   : > { %v2724_v60 = vpop.f32.mrf.mxu0 }
 0x132   : > { %v823_v61 = vpack.c.bf16 %v2723_v59, %v2720_v58 }
 0x133   : > { %v2725_v62 = vpop.f32.mrf.mxu0 }
 0x134   : > { %3088 = vmatmul.mubr.bf16.gmra.mxu1 %v823_v61  ;;  %v2726_v2 = vadd.f32 %v2725_v62, %v2724_v60  ;;  %v3637_v61 = vpop.f32.mrf.mxu1 }
 0x135   : > { %v2727_v63 = vpop.f32.mrf.mxu0 }
 0x137   : > { %v2728_v1 = vpop.f32.mrf.mxu0 }
 0x138   : > { %v2729_v0 = vadd.f32 %v2728_v1, %v2727_v63 }
 0x139   : > { %v2730_v3 = vpop.f32.mrf.mxu0 }
 0x13a   : > { %v824_v4 = vpack.c.bf16 %v2729_v0, %v2726_v2  ;;  %v3639_v0 = vpop.f32.mrf.mxu1 }
 0x13b   : > { %v2731_v5 = vpop.f32.mrf.mxu0 }
 0x13c   : > { %3091 = vmatprep.mubr.bf16.mxu1 %v824_v4  ;;  %v2732_v8 = vadd.f32 %v2731_v5, %v2730_v3  ;;  %v3641_v4 = vpop.f32.mrf.mxu1 }
 0x13d   : > { %v2733_v6 = vpop.f32.mrf.mxu0 }
 0x13e   : > { %v3643_v5 = vpop.f32.mrf.mxu1 }
 0x13f   : > { %v2734_v7 = vpop.f32.mrf.mxu0 }
 0x140   : > { %v2735_v9 = vadd.f32 %v2734_v7, %v2733_v6  ;;  %v3645_v6 = vpop.f32.mrf.mxu1 }
 0x141   : > { %v2736_v10 = vpop.f32.mrf.mxu0 }
 0x142   : > { %v825_v11 = vpack.c.bf16 %v2735_v9, %v2732_v8  ;;  %v3647_v7 = vpop.f32.mrf.mxu1 }
 0x143   : > { %v2737_v13 = vpop.f32.mrf.mxu0 }
 0x144   : > { %3092 = vmatmul.mubr.bf16.gmra.mxu1 %v825_v11  ;;  %v2738_v17 = vadd.f32 %v2737_v13, %v2736_v10  ;;  %v3649_v8 = vpop.f32.mrf.mxu1 }
 0x145   : > { %v2739_v15 = vpop.f32.mrf.mxu0 }
 0x146   : > { %v3651_v9 = vpop.f32.mrf.mxu1 }
 0x147   : > { %v2740_v16 = vpop.f32.mrf.mxu0 }
 0x148   : > { %v2741_v18 = vadd.f32 %v2740_v16, %v2739_v15  ;;  %v3653_v10 = vpop.f32.mrf.mxu1 }
 0x149   : > { %v2742_v21 = vpop.f32.mrf.mxu0 }
 0x14a   : > { %v826_v22 = vpack.c.bf16 %v2741_v18, %v2738_v17  ;;  %v3655_v11 = vpop.f32.mrf.mxu1 }
 0x14b   : > { %v2743_v23 = vpop.f32.mrf.mxu0 }
 0x14c   : > { %3095 = vmatprep.mubr.bf16.mxu1 %v826_v22  ;;  %v2744_v28 = vadd.f32 %v2743_v23, %v2742_v21  ;;  %v3657_v13 = vpop.f32.mrf.mxu1 }
 0x14d   : > { %v2745_v26 = vpop.f32.mrf.mxu0 }
 0x14e   : > { %v3659_v12 = vpop.f32.mrf.mxu1 }
 0x14f   : > { %v2746_v27 = vpop.f32.mrf.mxu0 }
 0x150   : > { %v2747_v29 = vadd.f32 %v2746_v27, %v2745_v26  ;;  %v3661_v15 = vpop.f32.mrf.mxu1 }
 0x151   : > { %v2748_v31 = vpop.f32.mrf.mxu0 }
 0x152   : > { %v827_v32 = vpack.c.bf16 %v2747_v29, %v2744_v28  ;;  %v3663_v16 = vpop.f32.mrf.mxu1 }
 0x153   : > { %v2749_v33 = vpop.f32.mrf.mxu0 }
 0x154   : > { %3096 = vmatmul.mubr.bf16.gmra.mxu1 %v827_v32  ;;  %v2750_v37 = vadd.f32 %v2749_v33, %v2748_v31  ;;  %v3665_v17 = vpop.f32.mrf.mxu1  ;;  %v3685_v31 = vld [vmem:[%s4140_s3] ss:$0 sm:$0xff] }
 0x155   : > { %v2751_v35 = vpop.f32.mrf.mxu0 }
 0x156   : > { %v3667_v18 = vpop.f32.mrf.mxu1 }
 0x157   : > { %v2752_v36 = vpop.f32.mrf.mxu0 }
 0x158   : > { %v2753_v38 = vadd.f32 %v2752_v36, %v2751_v35  ;;  %v3669_v20 = vpop.f32.mrf.mxu1 }
 0x159   : > { %v2754_v40 = vpop.f32.mrf.mxu0 }
 0x15a   : > { %v828_v41 = vpack.c.bf16 %v2753_v38, %v2750_v37  ;;  %v3671_v21 = vpop.f32.mrf.mxu1 }
 0x15b   : > { %v2755_v42 = vpop.f32.mrf.mxu0 }
 0x15c   : > { %3099 = vmatprep.mubr.bf16.mxu1 %v828_v41  ;;  %v2756_v46 = vadd.f32 %v2755_v42, %v2754_v40  ;;  %v3673_v22 = vpop.f32.mrf.mxu1 }
 0x15d   : > { %v2757_v44 = vpop.f32.mrf.mxu0 }
 0x15e   : > { %v3675_v23 = vpop.f32.mrf.mxu1 }
 0x15f   : > { %v2758_v45 = vpop.f32.mrf.mxu0 }
 0x160   : > { %v2759_v47 = vadd.f32 %v2758_v45, %v2757_v44  ;;  %v3677_v25 = vpop.f32.mrf.mxu1 }
 0x161   : > { %v2760_v49 = vpop.f32.mrf.mxu0 }
 0x162   : > { %v829_v50 = vpack.c.bf16 %v2759_v47, %v2756_v46  ;;  %v3679_v26 = vpop.f32.mrf.mxu1 }
 0x163   : > { %v2761_v51 = vpop.f32.mrf.mxu0 }
 0x164   : > { %3100 = vmatmul.mubr.bf16.gmra.mxu1 %v829_v50  ;;  %v2762_v55 = vadd.f32 %v2761_v51, %v2760_v49 }
 0x165   : > { %v2763_v53 = vpop.f32.mrf.mxu0 }
 0x167   : > { %v2764_v54 = vpop.f32.mrf.mxu0 }
 0x168   : > { %v2765_v56 = vadd.f32 %v2764_v54, %v2763_v53 }
 0x169   : > { %v2766_v58 = vpop.f32.mrf.mxu0 }
 0x16a   : > { %v830_v59 = vpack.c.bf16 %v2765_v56, %v2762_v55 }
 0x16b   : > { %v2767_v60 = vpop.f32.mrf.mxu0 }
 0x16c   : > { %3103 = vmatprep.mubr.bf16.mxu1 %v830_v59  ;;  %v2768_v1 = vadd.f32 %v2767_v60, %v2766_v58 }
 0x16d   : > { %v2769_v62 = vpop.f32.mrf.mxu0 }
 0x16f   : > { %v2770_v63 = vpop.f32.mrf.mxu0 }
 0x170   : > { %v2771_v2 = vadd.f32 %v2770_v63, %v2769_v62 }
 0x172   : > { %v831_v3 = vpack.c.bf16 %v2771_v2, %v2768_v1 }
 0x174   : > { %3104 = vmatmul.mubr.bf16.gmra.mxu1 %v831_v3 }
 0x1c4   : > { %v3077_v27 = vpop.f32.mrf.mxu1 }
 0x1c5   : > { %v1132_v29 = vadd.f32 %v3077_v27, %v3608_v14 }
 0x1c6   : > { %v1123_v28 = vpop.f32.mrf.mxu1 }
 0x1c7   : > { %v1124_v33 = vadd.f32 %v1123_v28, %v3613_v19  ;;  %v1256_v37 = vadd.f32 %v3685_v31, %v1132_v29 }
 0x1c8   : > { %v3078_v32 = vpop.f32.mrf.mxu1 }
 0x1c9   : > { %v1135_v35 = vadd.f32 %v3078_v32, %v3618_v24  ;;  %v1254_v41 = vadd.f32 %v3685_v31, %v1124_v33 }
 0x1ca   : > { %v1126_v36 = vpop.f32.mrf.mxu1 }
 0x1cb   : > { %v1257_v38 = vadd.f32 %v3685_v31, %v1135_v35  ;;  %v1127_v40 = vadd.f32 %v1126_v36, %v3623_v30 }
 0x1cd   : > { %v1293_v14 = vmax.f32 %v1256_v37, %v1257_v38  ;;  %v1255_v42 = vadd.f32 %v3685_v31, %v1127_v40  ;;  %v3696_v47 = vpack.c.bf16 %v1257_v38, %v1256_v37 }
 0x1cf   : > { %v1294_v44 = vrot.slane %v1293_v14, 4  ;;  %v1286_v45 = vmax.f32 %v1254_v41, %v1255_v42  ;;  %v3694_v46 = vpack.c.bf16 %v1255_v42, %v1254_v41 }
 0x1d1   : > { %v1295_v19 = vmax.f32 %v1293_v14, %v1294_v44  ;;  %v1287_v24 = vrot.slane %v1286_v45, 4  ;;  %3123 = vmatprep.mubr.bf16.mxu1 %v3694_v46 }
 0x1d2   : > { %3124 = vmatmul.mubr.bf16.vlgmr.msra.gmra.mxu1 %v3696_v47 }
 0x1d3   : > { %v1296_v49 = vrot.slane %v1295_v19, 2  ;;  %v1288_v50 = vmax.f32 %v1286_v45, %v1287_v24 }
 0x1d4   : > { %v3081_v30 = vpop.f32.mrf.mxu1 }
 0x1d5   : > { %v1297_v51 = vmax.f32 %v1295_v19, %v1296_v49  ;;  %v1289_v53 = vrot.slane %v1288_v50, 2  ;;  %v1148_v54 = vadd.f32 %v3081_v30, %v3625_v34 }
 0x1d6   : > { %v1139_v55 = vpop.f32.mrf.mxu1 }
 0x1d7   : > { %v1298_v56 = vrot.slane %v1297_v51, 1  ;;  %v1290_v58 = vmax.f32 %v1288_v50, %v1289_v53  ;;  %v1140_v62 = vadd.f32 %v1139_v55, %v3627_v39  ;;  %v1260_v1 = vadd.f32 %v3685_v31, %v1148_v54 }
 0x1d8   : > { %v3082_v59 = vpop.f32.mrf.mxu1 }
 0x1d9   : > { %v1291_v60 = vrot.slane %v1290_v58, 1  ;;  %v1151_v63 = vadd.f32 %v3082_v59, %v3629_v43  ;;  %v1299_v3 = vmax.f32 %v1297_v51, %v1298_v56  ;;  %v1258_v32 = vadd.f32 %v3685_v31, %v1140_v62 }
 0x1da   : > { %v1142_v2 = vpop.f32.mrf.mxu1 }
 0x1db   : > { %v1292_v27 = vmax.f32 %v1290_v58, %v1291_v60  ;;  %v1261_v28 = vadd.f32 %v3685_v31, %v1151_v63  ;;  %v1143_v29 = vadd.f32 %v1142_v2, %v3631_v48 }
 0x1dd   : > { %v2174_v34 = vsel %vm2173_vm0, %v1299_v3, %v1292_v27  ;;  %v1307_v33 = vmax.f32 %v1260_v1, %v1261_v28  ;;  %v1259_v35 = vadd.f32 %v3685_v31, %v1143_v29  ;;  %v3711_v37 = vpack.c.bf16 %v1261_v28, %v1260_v1 }
 0x1df   : > { %v1308_v39 = vrot.slane %v1307_v33, 4  ;;  %v1300_v36 = vmax.f32 %v1258_v32, %v1259_v35  ;;  %v3709_v43 = vpack.c.bf16 %v1259_v35, %v1258_v32 }
 0x1e1   : > { %v1309_v38 = vmax.f32 %v1307_v33, %v1308_v39  ;;  %v1301_v40 = vrot.slane %v1300_v36, 4  ;;  %3127 = vmatprep.mubr.bf16.mxu1 %v3709_v43 }
 0x1e2   : > { %3128 = vmatmul.mubr.bf16.gmra.mxu1 %v3711_v37 }
 0x1e3   : > { %v1310_v48 = vrot.slane %v1309_v38, 2  ;;  %v1302_v41 = vmax.f32 %v1300_v36, %v1301_v40 }
 0x1e4   : > { %v3085_v14 = vpop.f32.mrf.mxu1 }
 0x1e5   : > { %v1311_v42 = vmax.f32 %v1309_v38, %v1310_v48  ;;  %v1303_v44 = vrot.slane %v1302_v41, 2  ;;  %v1164_v24 = vadd.f32 %v3085_v14, %v3633_v52 }
 0x1e6   : > { %v1155_v45 = vpop.f32.mrf.mxu1 }
 0x1e7   : > { %v1304_v19 = vmax.f32 %v1302_v41, %v1303_v44  ;;  %v1312_v49 = vrot.slane %v1311_v42, 1  ;;  %v1156_v51 = vadd.f32 %v1155_v45, %v3635_v57  ;;  %v1264_v56 = vadd.f32 %v3685_v31, %v1164_v24 }
 0x1e8   : > { %v3086_v50 = vpop.f32.mrf.mxu1 }
 0x1e9   : > { %v1305_v30 = vrot.slane %v1304_v19, 1  ;;  %v1167_v53 = vadd.f32 %v3086_v50, %v3637_v61  ;;  %v1313_v60 = vmax.f32 %v1311_v42, %v1312_v49  ;;  %v1262_v62 = vadd.f32 %v3685_v31, %v1156_v51 }
 0x1ea   : > { %v1158_v54 = vpop.f32.mrf.mxu1 }
 0x1eb   : > { %v1306_v55 = vmax.f32 %v1304_v19, %v1305_v30  ;;  %v1265_v58 = vadd.f32 %v3685_v31, %v1167_v53  ;;  %v1159_v59 = vadd.f32 %v1158_v54, %v3639_v0 }
 0x1ed   : > { %v2176_v52 = vsel %vm2175_vm1, %v1306_v55, %v2174_v34  ;;  %v1321_v63 = vmax.f32 %v1264_v56, %v1265_v58  ;;  %v1263_v57 = vadd.f32 %v3685_v31, %v1159_v59  ;;  %v3727_v27 = vpack.c.bf16 %v1265_v58, %v1264_v56 }
 0x1ee   : > { %v2178_v61 = vsel %vm2177_vm2, %v1313_v60, %v2176_v52 }
 0x1ef   : > { %v1322_v1 = vrot.slane %v1321_v63, 4  ;;  %v1314_v2 = vmax.f32 %v1262_v62, %v1263_v57  ;;  %v3725_v3 = vpack.c.bf16 %v1263_v57, %v1262_v62 }
 0x1f1   : > { %v1323_v28 = vmax.f32 %v1321_v63, %v1322_v1  ;;  %v1315_v29 = vrot.slane %v1314_v2, 4  ;;  %3131 = vmatprep.mubr.bf16.mxu1 %v3725_v3 }
 0x1f2   : > { %3132 = vmatmul.mubr.bf16.gmra.mxu1 %v3727_v27 }
 0x1f3   : > { %v1324_v0 = vrot.slane %v1323_v28, 2  ;;  %v1316_v34 = vmax.f32 %v1314_v2, %v1315_v29 }
 0x1f4   : > { %v3089_v32 = vpop.f32.mrf.mxu1 }
 0x1f5   : > { %v1325_v33 = vmax.f32 %v1323_v28, %v1324_v0  ;;  %v1317_v35 = vrot.slane %v1316_v34, 2  ;;  %v1180_v38 = vadd.f32 %v3089_v32, %v3641_v4 }
 0x1f6   : > { %v1171_v39 = vpop.f32.mrf.mxu1 }
 0x1f7   : > { %v1318_v36 = vmax.f32 %v1316_v34, %v1317_v35  ;;  %v1326_v40 = vrot.slane %v1325_v33, 1  ;;  %v1172_v14 = vadd.f32 %v1171_v39, %v3643_v5  ;;  %v1268_v19 = vadd.f32 %v3685_v31, %v1180_v38 }
 0x1f8   : > { %v3090_v48 = vpop.f32.mrf.mxu1 }
 0x1f9   : > { %v1319_v41 = vrot.slane %v1318_v36, 1  ;;  %v1183_v42 = vadd.f32 %v3090_v48, %v3645_v6  ;;  %v1327_v50 = vmax.f32 %v1325_v33, %v1326_v40  ;;  %v1266_v30 = vadd.f32 %v3685_v31, %v1172_v14 }
 0x1fa   : > { %v1174_v44 = vpop.f32.mrf.mxu1 }
 0x1fb   : > { %v1320_v45 = vmax.f32 %v1318_v36, %v1319_v41  ;;  %v1269_v24 = vadd.f32 %v3685_v31, %v1183_v42  ;;  %v1175_v49 = vadd.f32 %v1174_v44, %v3647_v7 }
 0x1fd   : > { %v2180_v4 = vsel %vm2179_vm3, %v1320_v45, %v2178_v61  ;;  %v1335_v51 = vmax.f32 %v1268_v19, %v1269_v24  ;;  %v1267_v5 = vadd.f32 %v3685_v31, %v1175_v49  ;;  %v3743_v56 = vpack.c.bf16 %v1269_v24, %v1268_v19 }
 0x1fe   : > { %v2182_v6 = vsel %vm2181_vm4, %v1327_v50, %v2180_v4 }
 0x1ff   : > { %v1336_v53 = vrot.slane %v1335_v51, 4  ;;  %v1328_v54 = vmax.f32 %v1266_v30, %v1267_v5  ;;  %v3741_v55 = vpack.c.bf16 %v1267_v5, %v1266_v30 }
 0x201   : > { %v1337_v58 = vmax.f32 %v1335_v51, %v1336_v53  ;;  %v1329_v59 = vrot.slane %v1328_v54, 4  ;;  %3135 = vmatprep.mubr.bf16.mxu1 %v3741_v55 }
 0x202   : > { %3136 = vmatmul.mubr.bf16.gmra.mxu1 %v3743_v56 }
 0x203   : > { %v1338_v7 = vrot.slane %v1337_v58, 2  ;;  %v1330_v60 = vmax.f32 %v1328_v54, %v1329_v59 }
 0x204   : > { %v3093_v52 = vpop.f32.mrf.mxu1 }
 0x205   : > { %v1339_v62 = vmax.f32 %v1337_v58, %v1338_v7  ;;  %v1331_v63 = vrot.slane %v1330_v60, 2  ;;  %v1196_v1 = vadd.f32 %v3093_v52, %v3649_v8 }
 0x206   : > { %v1187_v57 = vpop.f32.mrf.mxu1 }
 0x207   : > { %v1332_v61 = vmax.f32 %v1330_v60, %v1331_v63  ;;  %v1340_v2 = vrot.slane %v1339_v62, 1  ;;  %v1188_v0 = vadd.f32 %v1187_v57, %v3651_v9  ;;  %v1272_v35 = vadd.f32 %v3685_v31, %v1196_v1 }
 0x208   : > { %v3094_v28 = vpop.f32.mrf.mxu1 }
 0x209   : > { %v1333_v29 = vrot.slane %v1332_v61, 1  ;;  %v1199_v34 = vadd.f32 %v3094_v28, %v3653_v10  ;;  %v1341_v38 = vmax.f32 %v1339_v62, %v1340_v2  ;;  %v1270_v8 = vadd.f32 %v3685_v31, %v1188_v0 }
 0x20a   : > { %v1190_v32 = vpop.f32.mrf.mxu1 }
 0x20b   : > { %v1334_v33 = vmax.f32 %v1332_v61, %v1333_v29  ;;  %v1273_v39 = vadd.f32 %v3685_v31, %v1199_v34  ;;  %v1191_v36 = vadd.f32 %v1190_v32, %v3655_v11 }
 0x20d   : > { %v1349_v40 = vmax.f32 %v1272_v35, %v1273_v39  ;;  %v1271_v48 = vadd.f32 %v3685_v31, %v1191_v36  ;;  %v2184_v9 = vsel %vm2183_vm5, %v1334_v33, %v2182_v6  ;;  %v3761_v44 = vpack.c.bf16 %v1273_v39, %v1272_v35 }
 0x20e   : > { %v3757_v10 = vsel %vm2185_vm6, %v1341_v38, %v2184_v9 }
 0x20f   : > { %4146 = vst [vmem:[#allocation2_spill] sm:$0xff] %v3757_v10  ;;  %v1350_v41 = vrot.slane %v1349_v40, 4  ;;  %v1342_v14 = vmax.f32 %v1270_v8, %v1271_v48  ;;  %v3759_v42 = vpack.c.bf16 %v1271_v48, %v1270_v8 }
 0x211   : > { %v1351_v45 = vmax.f32 %v1349_v40, %v1350_v41  ;;  %v1343_v19 = vrot.slane %v1342_v14, 4  ;;  %3139 = vmatprep.mubr.bf16.mxu1 %v3759_v42 }
 0x212   : > { %3140 = vmatmul.mubr.bf16.gmra.mxu1 %v3761_v44 }
 0x213   : > { %v1352_v11 = vrot.slane %v1351_v45, 2  ;;  %v1344_v24 = vmax.f32 %v1342_v14, %v1343_v19 }
 0x214   : > { %v3097_v49 = vpop.f32.mrf.mxu1 }
 0x215   : > { %v1353_v50 = vmax.f32 %v1351_v45, %v1352_v11  ;;  %v1345_v4 = vrot.slane %v1344_v24, 2  ;;  %v1212_v30 = vadd.f32 %v3097_v49, %v3657_v13 }
 0x216   : > { %v1203_v51 = vpop.f32.mrf.mxu1 }
 0x217   : > { %v1354_v5 = vrot.slane %v1353_v50, 1  ;;  %v1346_v6 = vmax.f32 %v1344_v24, %v1345_v4  ;;  %v1204_v58 = vadd.f32 %v1203_v51, %v3659_v12  ;;  %v1276_v7 = vadd.f32 %v3685_v31, %v1212_v30 }
 0x218   : > { %v3098_v53 = vpop.f32.mrf.mxu1 }
 0x219   : > { %v1347_v54 = vrot.slane %v1346_v6, 1  ;;  %v1215_v59 = vadd.f32 %v3098_v53, %v3661_v15  ;;  %v1355_v52 = vmax.f32 %v1353_v50, %v1354_v5  ;;  %v1274_v61 = vadd.f32 %v3685_v31, %v1204_v58 }
 0x21a   : > { %v1206_v60 = vpop.f32.mrf.mxu1 }
 0x21b   : > { %v1348_v62 = vmax.f32 %v1346_v6, %v1347_v54  ;;  %v1277_v63 = vadd.f32 %v3685_v31, %v1215_v59  ;;  %v1207_v57 = vadd.f32 %v1206_v60, %v3663_v16 }
 0x21d   : > { %v2187_v13 = vsel %vm2173_vm0, %v1355_v52, %v1348_v62  ;;  %v1363_v1 = vmax.f32 %v1276_v7, %v1277_v63  ;;  %v1275_v2 = vadd.f32 %v3685_v31, %v1207_v57  ;;  %v3776_v15 = vpack.c.bf16 %v1277_v63, %v1276_v7 }
 0x21f   : > { %v1364_v28 = vrot.slane %v1363_v1, 4  ;;  %v1356_v12 = vmax.f32 %v1274_v61, %v1275_v2  ;;  %v3774_v29 = vpack.c.bf16 %v1275_v2, %v1274_v61 }
 0x221   : > { %v1365_v0 = vmax.f32 %v1363_v1, %v1364_v28  ;;  %v1357_v34 = vrot.slane %v1356_v12, 4  ;;  %3143 = vmatprep.mubr.bf16.mxu1 %v3774_v29 }
 0x222   : > { %3144 = vmatmul.mubr.bf16.gmra.mxu1 %v3776_v15 }
 0x223   : > { %v1366_v16 = vrot.slane %v1365_v0, 2  ;;  %v1358_v32 = vmax.f32 %v1356_v12, %v1357_v34 }
 0x224   : > { %v3101_v33 = vpop.f32.mrf.mxu1 }
 0x225   : > { %v1367_v35 = vmax.f32 %v1365_v0, %v1366_v16  ;;  %v1359_v39 = vrot.slane %v1358_v32, 2  ;;  %v1228_v8 = vadd.f32 %v3101_v33, %v3665_v17 }
 0x226   : > { %v1219_v36 = vpop.f32.mrf.mxu1 }
 0x227   : > { %v1360_v38 = vmax.f32 %v1358_v32, %v1359_v39  ;;  %v1368_v40 = vrot.slane %v1367_v35, 1  ;;  %v1220_v41 = vadd.f32 %v1219_v36, %v3667_v18  ;;  %v1280_v11 = vadd.f32 %v3685_v31, %v1228_v8 }
 0x228   : > { %v3102_v48 = vpop.f32.mrf.mxu1 }
 0x229   : > { %v1361_v9 = vrot.slane %v1360_v38, 1  ;;  %v1231_v14 = vadd.f32 %v3102_v48, %v3669_v20  ;;  %v1369_v50 = vmax.f32 %v1367_v35, %v1368_v40  ;;  %v1278_v17 = vadd.f32 %v3685_v31, %v1220_v41 }
 0x22a   : > { %v1222_v45 = vpop.f32.mrf.mxu1 }
 0x22b   : > { %v1362_v19 = vmax.f32 %v1360_v38, %v1361_v9  ;;  %v1281_v24 = vadd.f32 %v3685_v31, %v1231_v14  ;;  %v1223_v49 = vadd.f32 %v1222_v45, %v3671_v21 }
 0x22d   : > { %v2188_v4 = vsel %vm2175_vm1, %v1362_v19, %v2187_v13  ;;  %v1377_v30 = vmax.f32 %v1280_v11, %v1281_v24  ;;  %v1279_v51 = vadd.f32 %v3685_v31, %v1223_v49  ;;  %v1411_v53 = vpack.c.bf16 %v1281_v24, %v1280_v11 }
 0x22e   : > { %v2189_v18 = vsel %vm2177_vm2, %v1369_v50, %v2188_v4  ;;  %v3362_v50 = vld [vmem:[%s3476_s24 + $0x54] ss:$8 sps:$4 sm:$0xff]   ;;  %v3363_v4 = vld [vmem:[%s3476_s24 + $0x50] ss:$8 sps:$4 sm:$0xff]  }
 0x22f   : > { %v1378_v5 = vrot.slane %v1377_v30, 4  ;;  %v1370_v20 = vmax.f32 %v1278_v17, %v1279_v51  ;;  %v1410_v6 = vpack.c.bf16 %v1279_v51, %v1278_v17  ;;  %v3364_v17 = vld [vmem:[%s3476_s24 + $0x64] ss:$8 sps:$4 sm:$0xff]   ;;  %v3322_v51 = vld [vmem:[%s4139_s2 + $0xb0] sm:$0xff]  }
 0x231   : > { %v1379_v54 = vmax.f32 %v1377_v30, %v1378_v5  ;;  %v1371_v58 = vrot.slane %v1370_v20, 4  ;;  %3147 = vmatprep.mubr.bf16.mxu1 %v1410_v6  ;;  %v3321_v30 = vld [vmem:[%s4139_s2 + $0xb8] sm:$0xff]   ;;  %v3365_v5 = vld [vmem:[%s3476_s24 + $0x60] ss:$8 sps:$4 sm:$0xff]  }
 0x232   : > { %3148 = vmatmul.mubr.bf16.gmra.mxu1 %v1411_v53  ;;  %3155 = vmatprep.subr.bf16.mxu1 %v3321_v30 }
 0x233   : > { %v1380_v59 = vrot.slane %v1379_v54, 2  ;;  %v1372_v21 = vmax.f32 %v1370_v20, %v1371_v58  ;;  %3156 = vmatpush3.bf16.msra.mxu1 %v3321_v30  ;;  %v3366_v20 = vld [vmem:[%s3476_s24 + $0x74] ss:$8 sps:$4 sm:$0xff]   ;;  %v3369_v58 = vld [vmem:[%s3476_s24 + $0x80] ss:$8 sps:$4 sm:$0xff]  }
 0x234   : > { %v3105_v7 = vpop.f32.mrf.mxu1  ;;  %3157 = vmatprep.subr.bf16.mxu1 %v3322_v51 }
 0x235   : > { %v1381_v60 = vmax.f32 %v1379_v54, %v1380_v59  ;;  %v1373_v52 = vrot.slane %v1372_v21, 2  ;;  %v1244_v57 = vadd.f32 %v3105_v7, %v3673_v22  ;;  %v3368_v54 = vld [vmem:[%s3476_s24 + $0x84] ss:$8 sps:$4 sm:$0xff]   ;;  %v3370_v59 = vld [vmem:[%s3476_s24 + $0x94] ss:$8 sps:$4 sm:$0xff]  }
 0x236   : > { %v1235_v62 = vpop.f32.mrf.mxu1  ;;  %v3326_v7 = vld [vmem:[%s4139_s2 + $0x90] sm:$0xff]  }
 0x237   : > { %v1374_v63 = vmax.f32 %v1372_v21, %v1373_v52  ;;  %v1382_v13 = vrot.slane %v1381_v60, 1  ;;  %v1236_v61 = vadd.f32 %v1235_v62, %v3675_v23  ;;  %v1284_v34 = vadd.f32 %v3685_v31, %v1244_v57  ;;  %3158 = vmatpush3.bf16.msra.mxu1 %v3322_v51  ;;  %v3325_v21 = vld [vmem:[%s4139_s2 + $0x98] sm:$0xff]   ;;  %v3372_v52 = vld [vmem:[%s3476_s24 + $0xa4] ss:$8 sps:$4 sm:$0xff]   ;;  %v3373_v57 = vld [vmem:[%s3476_s24 + $0xa0] ss:$8 sps:$4 sm:$0xff]  }
 0x238   : > { %v3106_v1 = vpop.f32.mrf.mxu1  ;;  %v3327_v62 = vld [vmem:[%s4139_s2 + $0x88] sm:$0xff]  }
 0x239   : > { %v1375_v2 = vrot.slane %v1374_v63, 1  ;;  %v1247_v28 = vadd.f32 %v3106_v1, %v3677_v25  ;;  %v1383_v33 = vmax.f32 %v1381_v60, %v1382_v13  ;;  %v1282_v35 = vadd.f32 %v3685_v31, %v1236_v61  ;;  %v3371_v60 = vld [vmem:[%s3476_s24 + $0x90] ss:$8 sps:$4 sm:$0xff]   ;;  %v3374_v13 = vld [vmem:[%s3476_s24 + $0xb4] ss:$8 sps:$4 sm:$0xff]  }
 0x23a   : > { %v1238_v12 = vpop.f32.mrf.mxu1  ;;  %v3375_v61 = vld [vmem:[%s3476_s24 + $0xb0] ss:$8 sps:$4 sm:$0xff]   ;;  %v3376_v1 = vld [vmem:[%s3476_s24 + $0xc4] ss:$8 sps:$4 sm:$0xff]  }
 0x23b   : > { %v1376_v0 = vmax.f32 %v1374_v63, %v1375_v2  ;;  %v1285_v16 = vadd.f32 %v3685_v31, %v1247_v28  ;;  %v1239_v32 = vadd.f32 %v1238_v12, %v3679_v26  ;;  %v3328_v63 = vld [vmem:[%s4139_s2 + $0x80] sm:$0xff]   ;;  %v3378_v28 = vld [vmem:[%s3476_s24 + $0xd4] ss:$8 sps:$4 sm:$0xff]   ;;  %v3379_v12 = vld [vmem:[%s3476_s24 + $0xd0] ss:$8 sps:$4 sm:$0xff]  }
 0x23c   : > { %v3377_v2 = vld [vmem:[%s3476_s24 + $0xc0] ss:$8 sps:$4 sm:$0xff]  }
 0x23d   : > { %v2190_v22 = vsel %vm2179_vm3, %v1376_v0, %v2189_v18  ;;  %v1391_v39 = vmax.f32 %v1284_v34, %v1285_v16  ;;  %v1283_v23 = vadd.f32 %v3685_v31, %v1239_v32  ;;  %v1413_v36 = vpack.c.bf16 %v1285_v16, %v1284_v34  ;;  %v3323_v18 = vld [vmem:[%s4139_s2 + $0xa8] sm:$0xff]   ;;  %v3382_v16 = vld [vmem:[%s3476_s24 + $0xf4] ss:$8 sps:$4 sm:$0xff]   ;;  %v3383_v32 = vld [vmem:[%s3476_s24 + $0xf0] ss:$8 sps:$4 sm:$0xff]  }
 0x23e   : > { %v2191_v38 = vsel %vm2181_vm4, %v1383_v33, %v2190_v22  ;;  %3159 = vmatprep.subr.bf16.mxu1 %v3323_v18  ;;  %v3380_v0 = vld [vmem:[%s3476_s24 + $0xe4] ss:$8 sps:$4 sm:$0xff]   ;;  %v3381_v34 = vld [vmem:[%s3476_s24 + $0xe0] ss:$8 sps:$4 sm:$0xff]  }
 0x23f   : > { %v1392_v25 = vrot.slane %v1391_v39, 4  ;;  %v1384_v8 = vmax.f32 %v1282_v35, %v1283_v23  ;;  %2820 = vmatprep.subr.bf16.mxu0 %v1413_v36  ;;  %v1412_v40 = vpack.c.bf16 %v1283_v23, %v1282_v35  ;;  %3160 = vmatpush3.bf16.msra.mxu1 %v3323_v18 }
 0x240   : > { %2821 = vmatpush3.bf16.msra.mxu0 %v3743_v56 }
 0x241   : > { %v1393_v48 = vmax.f32 %v1391_v39, %v1392_v25  ;;  %v1385_v9 = vrot.slane %v1384_v8, 4  ;;  %2822 = vmatprep.subr.bf16.mxu0 %v1412_v40  ;;  %3151 = vmatprep.mubr.bf16.mxu1 %v1412_v40 }
 0x242   : > { %3152 = vmatmul.mubr.bf16.gmra.mxu1 %v1413_v36 }
 0x243   : > { %v1394_v26 = vrot.slane %v1393_v48, 2  ;;  %v1386_v41 = vmax.f32 %v1384_v8, %v1385_v9 }
 0x244   : > { %2823 = vmatpush3.bf16.msra.mxu0 %v3741_v55 }
 0x245   : > { %v1395_v14 = vmax.f32 %v1393_v48, %v1394_v26  ;;  %v1387_v31 = vrot.slane %v1386_v41, 2  ;;  %2824 = vmatprep.subr.bf16.mxu0 %v1411_v53  ;;  %v3367_v53 = vld [vmem:[%s3476_s24 + $0x70] ss:$8 sps:$4 sm:$0xff]  }
 0x247   : > { %v1388_v45 = vmax.f32 %v1386_v41, %v1387_v31  ;;  %v1396_v19 = vrot.slane %v1395_v14, 1 }
 0x248   : > { %2825 = vmatpush3.bf16.msra.mxu0 %v3727_v27 }
 0x249   : > { %v1389_v11 = vrot.slane %v1388_v45, 1  ;;  %2826 = vmatprep.subr.bf16.mxu0 %v1410_v6  ;;  %v1397_v24 = vmax.f32 %v1395_v14, %v1396_v19  ;;  %v3324_v6 = vld [vmem:[%s4139_s2 + $0xa0] sm:$0xff]  }
 0x24a   : > { %3161 = vmatprep.subr.bf16.mxu1 %v3324_v6 }
 0x24b   : > { %v1390_v56 = vmax.f32 %v1388_v45, %v1389_v11  ;;  %3162 = vmatpush3.bf16.msra.mxu1 %v3324_v6 }
 0x24c   : > { %2827 = vmatpush3.bf16.msra.mxu0 %v3725_v3  ;;  %v3353_v3 = vld [vmem:[%s3476_s24] ss:$8 sps:$4 sm:$0xff]   ;;  %3163 = vmatprep.subr.bf16.mxu1 %v3325_v21 }
 0x24d   : > { %2828 = vmatprep.subr.bf16.mxu0 %v3776_v15  ;;  %v2192_v55 = vsel %vm2183_vm5, %v1390_v56, %v2191_v38  ;;  %v3354_v15 = vld [vmem:[%s3476_s24 + $0x14] ss:$8 sps:$4 sm:$0xff]  }
 0x24e   : > { %v3807_v49 = vsel %vm2185_vm6, %v1397_v24, %v2192_v55 }
 0x24f   : > { %4147 = vst [vmem:[#allocation3_spill] sm:$0xff] %v3807_v49  ;;  %3164 = vmatpush3.bf16.msra.mxu1 %v3325_v21 }
 0x250   : > { %2829 = vmatpush3.bf16.msra.mxu0 %v3711_v37  ;;  %v3355_v37 = vld [vmem:[%s3476_s24 + $0x10] ss:$8 sps:$4 sm:$0xff]   ;;  %3165 = vmatprep.subr.bf16.mxu1 %v3326_v7 }
 0x251   : > { %2830 = vmatprep.subr.bf16.mxu0 %v3774_v29  ;;  %v3360_v29 = vld [vmem:[%s3476_s24 + $0x44] ss:$8 sps:$4 sm:$0xff]  }
 0x253   : > { %3166 = vmatpush3.bf16.msra.mxu1 %v3326_v7 }
 0x254   : > { %2831 = vmatpush3.bf16.msra.mxu0 %v3709_v43  ;;  %v3356_v43 = vld [vmem:[%s3476_s24 + $0x24] ss:$8 sps:$4 sm:$0xff]   ;;  %3167 = vmatprep.subr.bf16.mxu1 %v3327_v62 }
 0x255   : > { %2832 = vmatprep.subr.bf16.mxu0 %v3761_v44  ;;  %v3357_v44 = vld [vmem:[%s3476_s24 + $0x20] ss:$8 sps:$4 sm:$0xff]  }
 0x257   : > { %3168 = vmatpush3.bf16.msra.mxu1 %v3327_v62 }
 0x258   : > { %2833 = vmatpush3.bf16.msra.mxu0 %v3696_v47  ;;  %v3358_v47 = vld [vmem:[%s3476_s24 + $0x34] ss:$8 sps:$4 sm:$0xff]   ;;  %3169 = vmatprep.subr.bf16.mxu1 %v3328_v63 }
 0x259   : > { %2834 = vmatprep.subr.bf16.mxu0 %v3759_v42  ;;  %v3359_v42 = vld [vmem:[%s3476_s24 + $0x30] ss:$8 sps:$4 sm:$0xff]  }
 0x25b   : > { %3170 = vmatpush3.bf16.msra.mxu1 %v3328_v63 }
 0x25c   : > { %2835 = vmatpush3.bf16.msra.mxu0 %v3694_v46  ;;  %v3361_v46 = vld [vmem:[%s3476_s24 + $0x40] ss:$8 sps:$4 sm:$0xff]  }
 0x25f   : > { %1447 = vmatmul.mubr.bf16.vlgmr.msra.gmra.mxu0 %v3353_v3 }
 0x260   : > { %1454 = vmatprep.mubr.bf16.mxu0 %v3354_v15 }
 0x267   : > { %1455 = vmatmul.mubr.bf16.gmra.mxu0 %v3355_v37 }
 0x268   : > { %1462 = vmatprep.mubr.bf16.mxu0 %v3356_v43 }
 0x26f   : > { %1463 = vmatmul.mubr.bf16.gmra.mxu0 %v3357_v44 }
 0x270   : > { %1470 = vmatprep.mubr.bf16.mxu0 %v3358_v47 }
 0x277   : > { %1471 = vmatmul.mubr.bf16.gmra.mxu0 %v3359_v42 }
 0x278   : > { %1478 = vmatprep.mubr.bf16.mxu0 %v3360_v29 }
 0x27f   : > { %1479 = vmatmul.mubr.bf16.gmra.mxu0 %v3361_v46 }
 0x280   : > { %1486 = vmatprep.mubr.bf16.mxu0 %v3362_v50 }
 0x287   : > { %1487 = vmatmul.mubr.bf16.gmra.mxu0 %v3363_v4 }
 0x288   : > { %1494 = vmatprep.mubr.bf16.mxu0 %v3364_v17 }
 0x28f   : > { %1495 = vmatmul.mubr.bf16.gmra.mxu0 %v3365_v5 }
 0x290   : > { %1502 = vmatprep.mubr.bf16.mxu0 %v3366_v20 }
 0x297   : > { %1503 = vmatmul.mubr.bf16.gmra.mxu0 %v3367_v53 }
 0x298   : > { %1510 = vmatprep.mubr.bf16.mxu0 %v3368_v54 }
 0x29f   : > { %1511 = vmatmul.mubr.bf16.gmra.mxu0 %v3369_v58 }
 0x2a0   : > { %1518 = vmatprep.mubr.bf16.mxu0 %v3370_v59 }
 0x2a7   : > { %1519 = vmatmul.mubr.bf16.gmra.mxu0 %v3371_v60 }
 0x2a8   : > { %1526 = vmatprep.mubr.bf16.mxu0 %v3372_v52 }
 0x2af   : > { %1527 = vmatmul.mubr.bf16.gmra.mxu0 %v3373_v57 }
 0x2b0   : > { %1534 = vmatprep.mubr.bf16.mxu0 %v3374_v13 }
 0x2b7   : > { %1535 = vmatmul.mubr.bf16.gmra.mxu0 %v3375_v61 }
 0x2b8   : > { %1542 = vmatprep.mubr.bf16.mxu0 %v3376_v1 }
 0x2bf   : > { %1543 = vmatmul.mubr.bf16.gmra.mxu0 %v3377_v2 }
 0x2c0   : > { %1550 = vmatprep.mubr.bf16.mxu0 %v3378_v28 }
 0x2c7   : > { %1551 = vmatmul.mubr.bf16.gmra.mxu0 %v3379_v12 }
 0x2c8   : > { %1558 = vmatprep.mubr.bf16.mxu0 %v3380_v0 }
 0x2cf   : > { %1559 = vmatmul.mubr.bf16.gmra.mxu0 %v3381_v34 }
 0x2d0   : > { %1566 = vmatprep.mubr.bf16.mxu0 %v3382_v16 }
 0x2d7   : > { %1567 = vmatmul.mubr.bf16.gmra.mxu0 %v3383_v32 }
 0x31f   : > { %v2836_v33 = vpop.f32.mrf.mxu0 }
 0x321   : > { %v2837_v35 = vpop.f32.mrf.mxu0 }
 0x322   : > { %v2838_v23 = vadd.f32 %v2837_v35, %v2836_v33 }
 0x323   : > { %v2839_v22 = vpop.f32.mrf.mxu0 }
 0x325   : > { %v2840_v39 = vpop.f32.mrf.mxu0 }
 0x326   : > { %v2841_v36 = vadd.f32 %v2840_v39, %v2839_v22 }
 0x327   : > { %v2842_v38 = vpop.f32.mrf.mxu0 }
 0x328   : > { %v1575_v25 = vpack.c.bf16 %v2841_v36, %v2838_v23 }
 0x329   : > { %v2843_v8 = vpop.f32.mrf.mxu0 }
 0x32a   : > { %3171 = vmatprep.mubr.bf16.mxu1 %v1575_v25  ;;  %v2844_v9 = vadd.f32 %v2843_v8, %v2842_v38 }
 0x32b   : > { %v2845_v40 = vpop.f32.mrf.mxu0 }
 0x32d   : > { %v2846_v48 = vpop.f32.mrf.mxu0 }
 0x32e   : > { %v2847_v26 = vadd.f32 %v2846_v48, %v2845_v40 }
 0x32f   : > { %v2848_v41 = vpop.f32.mrf.mxu0 }
 0x330   : > { %v1576_v14 = vpack.c.bf16 %v2847_v26, %v2844_v9 }
 0x331   : > { %v2849_v31 = vpop.f32.mrf.mxu0 }
 0x332   : > { %3172 = vmatmul.mubr.bf16.vlgmr.msra.gmra.mxu1 %v1576_v14  ;;  %v2850_v11 = vadd.f32 %v2849_v31, %v2848_v41 }
 0x333   : > { %v2851_v45 = vpop.f32.mrf.mxu0 }
 0x335   : > { %v2852_v19 = vpop.f32.mrf.mxu0 }
 0x336   : > { %v2853_v56 = vadd.f32 %v2852_v19, %v2851_v45 }
 0x337   : > { %v2854_v24 = vpop.f32.mrf.mxu0 }
 0x338   : > { %v1577_v55 = vpack.c.bf16 %v2853_v56, %v2850_v11 }
 0x339   : > { %v2855_v3 = vpop.f32.mrf.mxu0 }
 0x33a   : > { %3175 = vmatprep.mubr.bf16.mxu1 %v1577_v55  ;;  %v2856_v43 = vadd.f32 %v2855_v3, %v2854_v24 }
 0x33b   : > { %v2857_v15 = vpop.f32.mrf.mxu0 }
 0x33d   : > { %v2858_v37 = vpop.f32.mrf.mxu0 }
 0x33e   : > { %v2859_v44 = vadd.f32 %v2858_v37, %v2857_v15 }
 0x33f   : > { %v2860_v47 = vpop.f32.mrf.mxu0 }
 0x340   : > { %v1578_v42 = vpack.c.bf16 %v2859_v44, %v2856_v43 }
 0x341   : > { %v2861_v29 = vpop.f32.mrf.mxu0 }
 0x342   : > { %3176 = vmatmul.mubr.bf16.gmra.mxu1 %v1578_v42  ;;  %v2862_v4 = vadd.f32 %v2861_v29, %v2860_v47 }
 0x343   : > { %v2863_v46 = vpop.f32.mrf.mxu0 }
 0x345   : > { %v2864_v50 = vpop.f32.mrf.mxu0 }
 0x346   : > { %v2865_v17 = vadd.f32 %v2864_v50, %v2863_v46 }
 0x347   : > { %v2866_v30 = vpop.f32.mrf.mxu0 }
 0x348   : > { %v1579_v51 = vpack.c.bf16 %v2865_v17, %v2862_v4  ;;  %v3873_v17 = vpop.f32.mrf.mxu1 }
 0x349   : > { %v2867_v18 = vpop.f32.mrf.mxu0 }
 0x34a   : > { %3179 = vmatprep.mubr.bf16.mxu1 %v1579_v51  ;;  %v2868_v6 = vadd.f32 %v2867_v18, %v2866_v30 }
 0x34b   : > { %v2869_v5 = vpop.f32.mrf.mxu0 }
 0x34d   : > { %v2870_v20 = vpop.f32.mrf.mxu0 }
 0x34e   : > { %v2871_v53 = vadd.f32 %v2870_v20, %v2869_v5  ;;  %v3875_v20 = vpop.f32.mrf.mxu1 }
 0x34f   : > { %v2872_v54 = vpop.f32.mrf.mxu0 }
 0x350   : > { %v1580_v58 = vpack.c.bf16 %v2871_v53, %v2868_v6 }
 0x351   : > { %v2873_v59 = vpop.f32.mrf.mxu0 }
 0x352   : > { %3180 = vmatmul.mubr.bf16.gmra.mxu1 %v1580_v58  ;;  %v2874_v60 = vadd.f32 %v2873_v59, %v2872_v54  ;;  %v3877_v58 = vpop.f32.mrf.mxu1 }
 0x353   : > { %v2875_v21 = vpop.f32.mrf.mxu0 }
 0x355   : > { %v2876_v7 = vpop.f32.mrf.mxu0 }
 0x356   : > { %v2877_v52 = vadd.f32 %v2876_v7, %v2875_v21 }
 0x357   : > { %v2878_v62 = vpop.f32.mrf.mxu0 }
 0x358   : > { %v1581_v63 = vpack.c.bf16 %v2877_v52, %v2874_v60  ;;  %v3879_v52 = vpop.f32.mrf.mxu1 }
 0x359   : > { %v2879_v57 = vpop.f32.mrf.mxu0 }
 0x35a   : > { %3183 = vmatprep.mubr.bf16.mxu1 %v1581_v63  ;;  %v2880_v1 = vadd.f32 %v2879_v57, %v2878_v62  ;;  %v3881_v57 = vpop.f32.mrf.mxu1 }
 0x35b   : > { %v2881_v13 = vpop.f32.mrf.mxu0 }
 0x35d   : > { %v2882_v61 = vpop.f32.mrf.mxu0 }
 0x35e   : > { %v2883_v2 = vadd.f32 %v2882_v61, %v2881_v13 }
 0x35f   : > { %v2884_v28 = vpop.f32.mrf.mxu0 }
 0x360   : > { %v1582_v12 = vpack.c.bf16 %v2883_v2, %v2880_v1  ;;  %v3883_v1 = vpop.f32.mrf.mxu1 }
 0x361   : > { %v2885_v0 = vpop.f32.mrf.mxu0 }
 0x362   : > { %3184 = vmatmul.mubr.bf16.gmra.mxu1 %v1582_v12  ;;  %v2886_v32 = vadd.f32 %v2885_v0, %v2884_v28  ;;  %v3885_v0 = vpop.f32.mrf.mxu1 }
 0x363   : > { %v2887_v34 = vpop.f32.mrf.mxu0 }
 0x365   : > { %v2888_v16 = vpop.f32.mrf.mxu0 }
 0x366   : > { %v2889_v33 = vadd.f32 %v2888_v16, %v2887_v34  ;;  %v3887_v34 = vpop.f32.mrf.mxu1 }
 0x367   : > { %v2890_v35 = vpop.f32.mrf.mxu0 }
 0x368   : > { %v1583_v22 = vpack.c.bf16 %v2889_v33, %v2886_v32  ;;  %v3889_v16 = vpop.f32.mrf.mxu1 }
 0x369   : > { %v2891_v39 = vpop.f32.mrf.mxu0 }
 0x36a   : > { %3187 = vmatprep.mubr.bf16.mxu1 %v1583_v22  ;;  %v2892_v38 = vadd.f32 %v2891_v39, %v2890_v35  ;;  %v3891_v32 = vpop.f32.mrf.mxu1 }
 0x36b   : > { %v2893_v23 = vpop.f32.mrf.mxu0 }
 0x36c   : > { %v3893_v33 = vpop.f32.mrf.mxu1 }
 0x36d   : > { %v2894_v36 = vpop.f32.mrf.mxu0 }
 0x36e   : > { %v2895_v25 = vadd.f32 %v2894_v36, %v2893_v23  ;;  %v3895_v35 = vpop.f32.mrf.mxu1 }
 0x36f   : > { %v2896_v8 = vpop.f32.mrf.mxu0 }
 0x370   : > { %v1584_v40 = vpack.c.bf16 %v2895_v25, %v2892_v38  ;;  %v3897_v22 = vpop.f32.mrf.mxu1 }
 0x371   : > { %v2897_v48 = vpop.f32.mrf.mxu0 }
 0x372   : > { %3188 = vmatmul.mubr.bf16.gmra.mxu1 %v1584_v40  ;;  %v2898_v41 = vadd.f32 %v2897_v48, %v2896_v8  ;;  %v3899_v39 = vpop.f32.mrf.mxu1 }
 0x373   : > { %v2899_v9 = vpop.f32.mrf.mxu0 }
 0x374   : > { %v3901_v23 = vpop.f32.mrf.mxu1 }
 0x375   : > { %v2900_v26 = vpop.f32.mrf.mxu0 }
 0x376   : > { %v2901_v14 = vadd.f32 %v2900_v26, %v2899_v9  ;;  %v3903_v36 = vpop.f32.mrf.mxu1 }
 0x377   : > { %v2902_v31 = vpop.f32.mrf.mxu0 }
 0x378   : > { %v1585_v45 = vpack.c.bf16 %v2901_v14, %v2898_v41  ;;  %v3905_v38 = vpop.f32.mrf.mxu1  ;;  %v3329_v14 = vld [vmem:[%s4139_s2 + $0x178] sm:$0xff]  }
 0x379   : > { %v2903_v19 = vpop.f32.mrf.mxu0  ;;  %2980 = vmatprep.subr.bf16.mxu0 %v3329_v14 }
 0x37a   : > { %3191 = vmatprep.mubr.bf16.mxu1 %v1585_v45  ;;  %v2904_v24 = vadd.f32 %v2903_v19, %v2902_v31  ;;  %v3907_v25 = vpop.f32.mrf.mxu1  ;;  %v3330_v31 = vld [vmem:[%s4139_s2 + $0x138] sm:$0xff]   ;;  %v3331_v19 = vld [vmem:[%s4139_s2 + $0x170] sm:$0xff]  }
 0x37b   : > { %v2905_v11 = vpop.f32.mrf.mxu0  ;;  %2981 = vmatpush3.bf16.msra.mxu0 %v3330_v31 }
 0x37c   : > { %v3909_v8 = vpop.f32.mrf.mxu1  ;;  %2982 = vmatprep.subr.bf16.mxu0 %v3331_v19 }
 0x37d   : > { %v2906_v56 = vpop.f32.mrf.mxu0 }
 0x37e   : > { %v2907_v55 = vadd.f32 %v2906_v56, %v2905_v11  ;;  %v3911_v40 = vpop.f32.mrf.mxu1  ;;  %v3332_v11 = vld [vmem:[%s4139_s2 + $0x130] sm:$0xff]  }
 0x37f   : > { %v2908_v3 = vpop.f32.mrf.mxu0  ;;  %2983 = vmatpush3.bf16.msra.mxu0 %v3332_v11 }
 0x380   : > { %v1586_v15 = vpack.c.bf16 %v2907_v55, %v2904_v24  ;;  %v3913_v48 = vpop.f32.mrf.mxu1  ;;  %v3333_v24 = vld [vmem:[%s4139_s2 + $0x168] sm:$0xff]  }
 0x381   : > { %v2909_v37 = vpop.f32.mrf.mxu0  ;;  %v3334_v55 = vld [vmem:[%s4139_s2 + $0x128] sm:$0xff]   ;;  %2984 = vmatprep.subr.bf16.mxu0 %v3333_v24 }
 0x382   : > { %3192 = vmatmul.mubr.bf16.gmra.mxu1 %v1586_v15  ;;  %v2910_v47 = vadd.f32 %v2909_v37, %v2908_v3  ;;  %v3915_v9 = vpop.f32.mrf.mxu1  ;;  %v3335_v15 = vld [vmem:[%s4139_s2 + $0x160] sm:$0xff]  }
 0x383   : > { %v2911_v43 = vpop.f32.mrf.mxu0  ;;  %2985 = vmatpush3.bf16.msra.mxu0 %v3334_v55  ;;  %v3336_v37 = vld [vmem:[%s4139_s2 + $0x120] sm:$0xff]  }
 0x384   : > { %v3917_v26 = vpop.f32.mrf.mxu1  ;;  %2986 = vmatprep.subr.bf16.mxu0 %v3335_v15 }
 0x385   : > { %v2912_v44 = vpop.f32.mrf.mxu0 }
 0x386   : > { %v2913_v42 = vadd.f32 %v2912_v44, %v2911_v43  ;;  %v3919_v41 = vpop.f32.mrf.mxu1 }
 0x387   : > { %v2914_v29 = vpop.f32.mrf.mxu0  ;;  %2987 = vmatpush3.bf16.msra.mxu0 %v3336_v37 }
 0x388   : > { %v1587_v46 = vpack.c.bf16 %v2913_v42, %v2910_v47  ;;  %v3927_v45 = vpop.f32.mrf.mxu1  ;;  %v3337_v47 = vld [vmem:[%s4139_s2 + $0x158] sm:$0xff]  }
 0x389   : > { %v2915_v50 = vpop.f32.mrf.mxu0  ;;  %v3338_v42 = vld [vmem:[%s4139_s2 + $0x118] sm:$0xff]   ;;  %2988 = vmatprep.subr.bf16.mxu0 %v3337_v47 }
 0x38a   : > { %3195 = vmatprep.mubr.bf16.mxu1 %v1587_v46  ;;  %v2916_v51 = vadd.f32 %v2915_v50, %v2914_v29  ;;  %v3935_v56 = vpop.f32.mrf.mxu1  ;;  %v3339_v46 = vld [vmem:[%s4139_s2 + $0x150] sm:$0xff]  }
 0x38b   : > { %v2917_v4 = vpop.f32.mrf.mxu0  ;;  %2989 = vmatpush3.bf16.msra.mxu0 %v3338_v42  ;;  %v3340_v50 = vld [vmem:[%s4139_s2 + $0x110] sm:$0xff]  }
 0x38c   : > { %v3943_v3 = vpop.f32.mrf.mxu1  ;;  %2990 = vmatprep.subr.bf16.mxu0 %v3339_v46 }
 0x38d   : > { %v2918_v30 = vpop.f32.mrf.mxu0 }
 0x38e   : > { %v2919_v18 = vadd.f32 %v2918_v30, %v2917_v4  ;;  %v3951_v43 = vpop.f32.mrf.mxu1  ;;  %v3341_v30 = vld [vmem:[%s4139_s2 + $0x148] sm:$0xff]  }
 0x38f   : > { %v2920_v5 = vpop.f32.mrf.mxu0  ;;  %2991 = vmatpush3.bf16.msra.mxu0 %v3340_v50 }
 0x390   : > { %v1588_v6 = vpack.c.bf16 %v2919_v18, %v2916_v51  ;;  %v3953_v44 = vpop.f32.mrf.mxu1  ;;  %v3342_v51 = vld [vmem:[%s4139_s2 + $0x108] sm:$0xff]   ;;  %2992 = vmatprep.subr.bf16.mxu0 %v3341_v30  ;;  %v3343_v18 = vld [vmem:[%s4139_s2 + $0x140] sm:$0xff]  }
 0x391   : > { %v2921_v53 = vpop.f32.mrf.mxu0  ;;  %v4015_v30 = vld [vmem:[%s4140_s3 + $0x1] ss:$0 sm:$0xff] }
 0x392   : > { %3196 = vmatmul.mubr.bf16.gmra.mxu1 %v1588_v6  ;;  %v2922_v21 = vadd.f32 %v2921_v53, %v2920_v5  ;;  %v3961_v29 = vpop.f32.mrf.mxu1  ;;  %v3344_v5 = vld [vmem:[%s4139_s2 + $0x100] sm:$0xff]  }
 0x393   : > { %v2923_v54 = vpop.f32.mrf.mxu0  ;;  %2993 = vmatpush3.bf16.msra.mxu0 %v3342_v51 }
 0x394   : > { %v3969_v4 = vpop.f32.mrf.mxu1  ;;  %2994 = vmatprep.subr.bf16.mxu0 %v3343_v18 }
 0x395   : > { %v2924_v59 = vpop.f32.mrf.mxu0 }
 0x396   : > { %v2925_v7 = vadd.f32 %v2924_v59, %v2923_v54  ;;  %v3983_v6 = vpop.f32.mrf.mxu1  ;;  %v3345_v59 = vld [vmem:[%s4139_s2 + $0x1b8] sm:$0xff]  }
 0x397   : > { %v2926_v60 = vpop.f32.mrf.mxu0  ;;  %2995 = vmatpush3.bf16.msra.mxu0 %v3344_v5 }
 0x398   : > { %v1589_v62 = vpack.c.bf16 %v2925_v7, %v2922_v21  ;;  %v4142_v21 = vmov 0.0   ;;  %v3346_v7 = vld [vmem:[%s4139_s2 + $0x1b0] sm:$0xff]  }
 0x399   : > { %v2927_v63 = vpop.f32.mrf.mxu0  ;;  %3203 = vmatprep.subr.bf16.mxu1 %v4142_v21 }
 0x39a   : > { %3199 = vmatprep.mubr.bf16.mxu1 %v1589_v62  ;;  %v2928_v2 = vadd.f32 %v2927_v63, %v2926_v60  ;;  %3204 = vmatpush3.bf16.msra.mxu1 %v3345_v59  ;;  %v3347_v62 = vld [vmem:[%s4139_s2 + $0x1a8] sm:$0xff]  }
 0x39b   : > { %v2929_v13 = vpop.f32.mrf.mxu0  ;;  %3205 = vmatprep.subr.bf16.mxu1 %v4142_v21 }
 0x39d   : > { %v2930_v61 = vpop.f32.mrf.mxu0 }
 0x39e   : > { %v2931_v28 = vadd.f32 %v2930_v61, %v2929_v13  ;;  %3206 = vmatpush3.bf16.msra.mxu1 %v3346_v7  ;;  %v3348_v61 = vld [vmem:[%s4139_s2 + $0x1a0] sm:$0xff]  }
 0x39f   : > { %3207 = vmatprep.subr.bf16.mxu1 %v4142_v21 }
 0x3a0   : > { %v1590_v12 = vpack.c.bf16 %v2931_v28, %v2928_v2 }
 0x3a2   : > { %3200 = vmatmul.mubr.bf16.gmra.mxu1 %v1590_v12 }
 0x3a3   : > { %3208 = vmatpush3.bf16.msra.mxu1 %v3347_v62 }
 0x3a4   : > { %3209 = vmatprep.subr.bf16.mxu1 %v4142_v21 }
 0x3a7   : > { %3210 = vmatpush3.bf16.msra.mxu1 %v3348_v61 }
 0x3a8   : > { %3211 = vmatprep.subr.bf16.mxu1 %v4142_v21 }
 0x3f2   : > { %v3173_v53 = vpop.f32.mrf.mxu1 }
 0x3f3   : > { %v1891_v5 = vadd.f32 %v3173_v53, %v3873_v17 }
 0x3f4   : > { %v1882_v54 = vpop.f32.mrf.mxu1 }
 0x3f5   : > { %v1883_v50 = vadd.f32 %v1882_v54, %v3875_v20 }
 0x3f6   : > { %v3174_v60 = vpop.f32.mrf.mxu1 }
 0x3f7   : > { %v1894_v51 = vadd.f32 %v3174_v60, %v3877_v58  ;;  %v2013_v7 = vadd.f32 %v4015_v30, %v1883_v50 }
 0x3f8   : > { %v1885_v63 = vpop.f32.mrf.mxu1 }
 0x3f9   : > { %v1886_v42 = vadd.f32 %v1885_v63, %v3879_v52  ;;  %v2016_v62 = vadd.f32 %v4015_v30, %v1894_v51  ;;  %v2015_v63 = vadd.f32 %v4015_v30, %v1891_v5 }
 0x3fb   : > { %v2014_v18 = vadd.f32 %v4015_v30, %v1886_v42  ;;  %v2052_v54 = vmax.f32 %v2015_v63, %v2016_v62 }
 0x3fd   : > { %v2045_v52 = vmax.f32 %v2013_v7, %v2014_v18  ;;  %v2053_v10 = vrot.slane %v2052_v54, 4 }
 0x3ff   : > { %v2046_v21 = vrot.slane %v2045_v52, 4  ;;  %v2054_v42 = vmax.f32 %v2052_v54, %v2053_v10 }
 0x401   : > { %v2047_v49 = vmax.f32 %v2045_v52, %v2046_v21  ;;  %v2055_v63 = vrot.slane %v2054_v42, 2 }
 0x402   : > { %v3177_v13 = vpop.f32.mrf.mxu1 }
 0x403   : > { %v2048_v50 = vrot.slane %v2047_v49, 2  ;;  %v1907_v51 = vadd.f32 %v3177_v13, %v3881_v57  ;;  %v4040_v54 = vmax.f32 %v2054_v42, %v2055_v63 }
 0x404   : > { %v1898_v2 = vpop.f32.mrf.mxu1 }
 0x405   : > { %v1899_v17 = vadd.f32 %v1898_v2, %v3883_v1  ;;  %v2019_v1 = vadd.f32 %v4015_v30, %v1907_v51 }
 0x406   : > { %v3178_v28 = vpop.f32.mrf.mxu1 }
 0x407   : > { %v1910_v53 = vadd.f32 %v3178_v28, %v3885_v0  ;;  %v2017_v7 = vadd.f32 %v4015_v30, %v1899_v17 }
 0x408   : > { %v1901_v12 = vpop.f32.mrf.mxu1 }
 0x409   : > { %v1902_v58 = vadd.f32 %v1901_v12, %v3887_v34  ;;  %v2020_v62 = vadd.f32 %v4015_v30, %v1910_v53  ;;  %v4032_v12 = vmax.f32 %v2047_v49, %v2048_v50 }
 0x40b   : > { %v2018_v18 = vadd.f32 %v4015_v30, %v1902_v58  ;;  %v2066_v28 = vmax.f32 %v2019_v1, %v2020_v62 }
 0x40d   : > { %v2059_v10 = vmax.f32 %v2017_v7, %v2018_v18 }
 0x412   : > { %v3181_v14 = vpop.f32.mrf.mxu1 }
 0x414   : > { %v1914_v31 = vpop.f32.mrf.mxu1 }
 0x415   : > { %v1915_v52 = vadd.f32 %v1914_v31, %v3891_v32 }
 0x416   : > { %v4002_v19 = vpop.f32.mrf.mxu1 }
 0x418   : > { %v1917_v11 = vpop.f32.mrf.mxu1 }
 0x419   : > { %v1918_v0 = vadd.f32 %v1917_v11, %v3895_v35  ;;  %v2050_v35 = vrot.slane %v4032_v12, 1  ;;  %v2060_v11 = vrot.slane %v2059_v10, 4 }
 0x41b   : > { %v2061_v50 = vmax.f32 %v2059_v10, %v2060_v11 }
 0x422   : > { %v4004_v24 = vpop.f32.mrf.mxu1 }
 0x424   : > { %v4006_v55 = vpop.f32.mrf.mxu1 }
 0x426   : > { %v4008_v15 = vpop.f32.mrf.mxu1 }
 0x428   : > { %v1933_v37 = vpop.f32.mrf.mxu1 }
 0x429   : > { %v1934_v58 = vadd.f32 %v1933_v37, %v3903_v36 }
 0x432   : > { %v3189_v47 = vpop.f32.mrf.mxu1 }
 0x434   : > { %v1946_v46 = vpop.f32.mrf.mxu1 }
 0x435   : > { %v1947_v57 = vadd.f32 %v1946_v46, %v3907_v25  ;;  %v1923_v25 = vadd.f32 %v3181_v14, %v3889_v16  ;;  %v2021_v46 = vadd.f32 %v4015_v30, %v1915_v52 }
 0x436   : > { %v3190_v59 = vpop.f32.mrf.mxu1 }
 0x437   : > { %v1958_v13 = vadd.f32 %v3190_v59, %v3909_v8  ;;  %v2022_v8 = vadd.f32 %v4015_v30, %v1918_v0  ;;  %v1926_v59 = vadd.f32 %v4002_v19, %v3893_v33  ;;  %v2023_v18 = vadd.f32 %v4015_v30, %v1923_v25 }
 0x438   : > { %v1949_v20 = vpop.f32.mrf.mxu1 }
 0x439   : > { %v1950_v21 = vadd.f32 %v1949_v20, %v3911_v40  ;;  %v1955_v40 = vadd.f32 %v3189_v47, %v3905_v38  ;;  %v2032_v32 = vadd.f32 %v4015_v30, %v1958_v13  ;;  %v2067_v47 = vrot.slane %v2066_v28, 4 }
 0x43a   : > { %v2073_v51 = vmax.f32 %v2021_v46, %v2022_v8  ;;  %v2024_v37 = vadd.f32 %v4015_v30, %v1926_v59 }
 0x43b   : > { %v2030_v49 = vadd.f32 %v4015_v30, %v1950_v21  ;;  %v2031_v16 = vadd.f32 %v4015_v30, %v1955_v40  ;;  %v2068_v10 = vmax.f32 %v2066_v28, %v2067_v47  ;;  %v2051_v28 = vmax.f32 %v4032_v12, %v2050_v35 }
 0x43c   : > { %v2074_v63 = vrot.slane %v2073_v51, 4  ;;  %v2080_v0 = vmax.f32 %v2023_v18, %v2024_v37 }
 0x442   : > { %v3193_v61 = vpop.f32.mrf.mxu1 }
 0x443   : > { %v1971_v17 = vadd.f32 %v3193_v61, %v3913_v48  ;;  %v1942_v48 = vadd.f32 %v4008_v15, %v3901_v23  ;;  %v2026_v61 = vadd.f32 %v4015_v30, %v1934_v58  ;;  %v1939_v23 = vadd.f32 %v4004_v24, %v3897_v22 }
 0x444   : > { %v1962_v27 = vpop.f32.mrf.mxu1 }
 0x445   : > { %v1963_v2 = vadd.f32 %v1962_v27, %v3915_v9  ;;  %v2029_v27 = vadd.f32 %v4015_v30, %v1947_v57  ;;  %v2027_v22 = vadd.f32 %v4015_v30, %v1939_v23 }
 0x446   : > { %v3194_v60 = vpop.f32.mrf.mxu1 }
 0x447   : > { %v2033_v9 = vadd.f32 %v4015_v30, %v1963_v2  ;;  %v1974_v38 = vadd.f32 %v3194_v60, %v3917_v26  ;;  %v2101_v14 = vmax.f32 %v2029_v27, %v2030_v49  ;;  %v1931_v26 = vadd.f32 %v4006_v55, %v3899_v39 }
 0x448   : > { %v1965_v5 = vpop.f32.mrf.mxu1  ;;  %v2057_v49 = vrot.slane %v4040_v54, 1  ;;  %v2069_v27 = vrot.slane %v2068_v10, 2 }
 0x449   : > { %v1966_v34 = vadd.f32 %v1965_v5, %v3919_v41  ;;  %v2108_v5 = vmax.f32 %v2031_v16, %v2032_v32  ;;  %v2036_v33 = vadd.f32 %v4015_v30, %v1974_v38  ;;  %v2102_v39 = vrot.slane %v2101_v14, 4 }
 0x44a   : > { %v2025_v21 = vadd.f32 %v4015_v30, %v1931_v26  ;;  %v2058_v59 = vmax.f32 %v4040_v54, %v2057_v49 }
 0x44b   : > { %v2034_v41 = vadd.f32 %v4015_v30, %v1966_v34  ;;  %v2109_v15 = vrot.slane %v2108_v5, 4  ;;  %v2103_v2 = vmax.f32 %v2101_v14, %v2102_v39 }
 0x44c   : > { %v2087_v57 = vmax.f32 %v2025_v21, %v2026_v61  ;;  %v2212_v26 = vsel %vm2173_vm0, %v2058_v59, %v2051_v28 }
 0x44d   : > { %v2115_v53 = vmax.f32 %v2033_v9, %v2034_v41  ;;  %v2062_v41 = vrot.slane %v2061_v50, 2  ;;  %v2110_v24 = vmax.f32 %v2108_v5, %v2109_v15  ;;  %v2081_v9 = vrot.slane %v2080_v0, 4 }
 0x44e   : > { %v2088_v32 = vrot.slane %v2087_v57, 4 }
 0x44f   : > { %v2116_v55 = vrot.slane %v2115_v53, 4  ;;  %v2063_v58 = vmax.f32 %v2061_v50, %v2062_v41  ;;  %v2082_v18 = vmax.f32 %v2080_v0, %v2081_v9 }
 0x450   : > { %v2089_v12 = vmax.f32 %v2087_v57, %v2088_v32 }
 0x451   : > { %v2117_v52 = vmax.f32 %v2115_v53, %v2116_v55  ;;  %v2064_v37 = vrot.slane %v2063_v58, 1 }
 0x452   : > { %v3197_v20 = vpop.f32.mrf.mxu1 }
 0x453   : > { %v1987_v62 = vadd.f32 %v3197_v20, %v3927_v45  ;;  %v2028_v45 = vadd.f32 %v4015_v30, %v1942_v48  ;;  %v2075_v20 = vmax.f32 %v2073_v51, %v2074_v63  ;;  %v2118_v47 = vrot.slane %v2117_v52, 2 }
 0x454   : > { %v1978_v31 = vpop.f32.mrf.mxu1 }
 0x455   : > { %v1979_v60 = vadd.f32 %v1978_v31, %v3935_v56  ;;  %v2035_v56 = vadd.f32 %v4015_v30, %v1971_v17  ;;  %v2039_v40 = vadd.f32 %v4015_v30, %v1987_v62  ;;  %v2094_v38 = vmax.f32 %v2027_v22, %v2028_v45 }
 0x456   : > { %v3198_v42 = vpop.f32.mrf.mxu1  ;;  %v2104_v31 = vrot.slane %v2103_v2, 2  ;;  %v2076_v14 = vrot.slane %v2075_v20, 2  ;;  %v2111_v17 = vrot.slane %v2110_v24, 2  ;;  %v2090_v62 = vrot.slane %v2089_v12, 2 }
 0x457   : > { %v1990_v36 = vadd.f32 %v3198_v42, %v3943_v3  ;;  %v2037_v3 = vadd.f32 %v4015_v30, %v1979_v60  ;;  %v2122_v1 = vmax.f32 %v2035_v56, %v2036_v33  ;;  %v2070_v60 = vmax.f32 %v2068_v10, %v2069_v27 }
 0x458   : > { %v1981_v19 = vpop.f32.mrf.mxu1  ;;  %v2095_v5 = vrot.slane %v2094_v38, 4  ;;  %v2105_v33 = vmax.f32 %v2103_v2, %v2104_v31  ;;  %v2077_v61 = vmax.f32 %v2075_v20, %v2076_v14  ;;  %v2065_v10 = vmax.f32 %v2063_v58, %v2064_v37 }
 0x459   : > { %v1982_v7 = vadd.f32 %v1981_v19, %v3951_v43  ;;  %v2040_v43 = vadd.f32 %v4015_v30, %v1990_v36  ;;  %v2123_v25 = vrot.slane %v2122_v1, 4  ;;  %v2119_v36 = vmax.f32 %v2117_v52, %v2118_v47 }
 0x45a   : > { %v2106_v23 = vrot.slane %v2105_v33, 1  ;;  %v2078_v45 = vrot.slane %v2077_v61, 1  ;;  %v2091_v2 = vmax.f32 %v2089_v12, %v2090_v62  ;;  %v2071_v49 = vrot.slane %v2070_v60, 1 }
 0x45b   : > { %v2038_v34 = vadd.f32 %v4015_v30, %v1982_v7  ;;  %v2136_v8 = vmax.f32 %v2039_v40, %v2040_v43  ;;  %v2124_v53 = vmax.f32 %v2122_v1, %v2123_v25  ;;  %v2112_v7 = vmax.f32 %v2110_v24, %v2111_v17 }
 0x45c   : > { %v2120_v15 = vrot.slane %v2119_v36, 1  ;;  %v2107_v20 = vmax.f32 %v2105_v33, %v2106_v23  ;;  %v2079_v32 = vmax.f32 %v2077_v61, %v2078_v45  ;;  %v2092_v9 = vrot.slane %v2091_v2, 1  ;;  %v3349_v23 = vld [vmem:[%s4139_s2 + $0x198] sm:$0xff]  }
 0x45d   : > { %v2129_v13 = vmax.f32 %v2037_v3, %v2038_v34  ;;  %v2137_v42 = vrot.slane %v2136_v8, 4  ;;  %v2125_v39 = vrot.slane %v2124_v53, 2  ;;  %v2083_v3 = vrot.slane %v2082_v18, 2  ;;  %3212 = vmatpush3.bf16.msra.mxu1 %v3349_v23 }
 0x45e   : > { %v2096_v34 = vmax.f32 %v2094_v38, %v2095_v5  ;;  %v2113_v0 = vrot.slane %v2112_v7, 1  ;;  %v2072_v47 = vmax.f32 %v2070_v60, %v2071_v49  ;;  %v2093_v12 = vmax.f32 %v2091_v2, %v2092_v9 }
 0x45f   : > { %v2130_v11 = vrot.slane %v2129_v13, 4  ;;  %v2138_v56 = vmax.f32 %v2136_v8, %v2137_v42  ;;  %v2126_v57 = vmax.f32 %v2124_v53, %v2125_v39  ;;  %v2213_v8 = vsel %vm2175_vm1, %v2065_v10, %v2212_v26 }
 0x460   : > { %v2097_v41 = vrot.slane %v2096_v34, 2  ;;  %v2114_v28 = vmax.f32 %v2112_v7, %v2113_v0  ;;  %v2214_v26 = vsel %vm2177_vm2, %v2072_v47, %v2213_v8 }
 0x461   : > { %v2131_v16 = vmax.f32 %v2129_v13, %v2130_v11  ;;  %v2139_v13 = vrot.slane %v2138_v56, 2  ;;  %v2121_v11 = vmax.f32 %v2119_v36, %v2120_v15  ;;  %v4151_v15 = vmov 0.0  }
 0x462   : > { %v3201_v46 = vpop.f32.mrf.mxu1  ;;  %v2098_v59 = vmax.f32 %v2096_v34, %v2097_v41  ;;  %v2219_v58 = vsel %vm2173_vm0, %v2114_v28, %v2107_v20  ;;  %3213 = vmatprep.subr.bf16.mxu1 %v4151_v15  ;;  %3219 = vmatprep.mubr.msk.bf16.mxu1 %vm3393_vm7, %v4151_v15  ;;  %v2646_v20 = vld [vmem:[%s4140_s3 + $0x3] ss:$0 sm:$0xff] }
 0x463   : > { %v2003_v35 = vadd.f32 %v3201_v46, %v3953_v44  ;;  %v2132_v54 = vrot.slane %v2131_v16, 2  ;;  %v2140_v27 = vmax.f32 %v2138_v56, %v2139_v13 }
 0x464   : > { %v1994_v51 = vpop.f32.mrf.mxu1  ;;  %v2099_v33 = vrot.slane %v2098_v59, 1 }
 0x465   : > { %v1995_v50 = vadd.f32 %v1994_v51, %v3961_v29  ;;  %v2043_v63 = vadd.f32 %v4015_v30, %v2003_v35  ;;  %v2133_v1 = vmax.f32 %v2131_v16, %v2132_v54  ;;  %v2220_v16 = vsel %vm2175_vm1, %v2121_v11, %v2219_v58 }
 0x466   : > { %v3202_v19 = vpop.f32.mrf.mxu1  ;;  %v2141_v51 = vrot.slane %v2140_v27, 1  ;;  %v2100_v7 = vmax.f32 %v2098_v59, %v2099_v33 }
 0x467   : > { %v2006_v48 = vadd.f32 %v3202_v19, %v3969_v4  ;;  %v2041_v29 = vadd.f32 %v4015_v30, %v1995_v50  ;;  %v2134_v22 = vrot.slane %v2133_v1, 1 }
 0x468   : > { %v1997_v55 = vpop.f32.mrf.mxu1  ;;  %v2142_v54 = vmax.f32 %v2140_v27, %v2141_v51 }
 0x469   : > { %v2044_v44 = vadd.f32 %v4015_v30, %v2006_v48  ;;  %v1998_v21 = vadd.f32 %v1997_v55, %v3983_v6  ;;  %v2084_v6 = vmax.f32 %v2082_v18, %v2083_v3  ;;  %v2135_v14 = vmax.f32 %v2133_v1, %v2134_v22  ;;  %v4149_v3 = vld [vmem:[#allocation2_spill] sm:$0xff]  ;;  %v3350_v1 = vld [vmem:[%s4139_s2 + $0x190] sm:$0xff]  }
 0x46a   : > { %v2215_v18 = vsel %vm2179_vm3, %v2079_v32, %v2214_v26  ;;  %3214 = vmatpush3.bf16.msra.mxu1 %v3350_v1 }
 0x46b   : > { %v2150_v4 = vmax.f32 %v2043_v63, %v2044_v44  ;;  %v2042_v43 = vadd.f32 %v4015_v30, %v1998_v21  ;;  %v2127_v30 = vrot.slane %v2126_v57, 1  ;;  %v2085_v46 = vrot.slane %v2084_v6, 1  ;;  %v4148_v21 = vld [vmem:[#allocation3_spill] sm:$0xff]  ;;  %3215 = vmatprep.subr.bf16.mxu1 %v4151_v15 }
 0x46c   : > { %v4150_v34 = vpack.c.bf16 %v4148_v21, %v4149_v3 }
 0x46d   : > { %v2151_v52 = vrot.slane %v2150_v4, 4  ;;  %v2143_v40 = vmax.f32 %v2041_v29, %v2042_v43  ;;  %v2128_v42 = vmax.f32 %v2126_v57, %v2127_v30  ;;  %v2086_v5 = vmax.f32 %v2084_v6, %v2085_v46  ;;  %v3351_v29 = vld [vmem:[%s4139_s2 + $0x188] sm:$0xff]   ;;  %v2629_v57 = vld [vmem:[%s4140_s3 + $0x2] ss:$0 sm:$0xff] }
 0x46e   : > { %3216 = vmatpush3.bf16.msra.mxu1 %v3351_v29 }
 0x46f   : > { %v2152_v24 = vmax.f32 %v2150_v4, %v2151_v52  ;;  %v2144_v25 = vrot.slane %v2143_v40, 4  ;;  %v2221_v36 = vsel %vm2177_vm2, %v2128_v42, %v2220_v16  ;;  %v2216_v50 = vsel %vm2181_vm4, %v2086_v5, %v2215_v18  ;;  %3217 = vmatprep.subr.bf16.mxu1 %v4151_v15  ;;  %v3352_v4 = vld [vmem:[%s4139_s2 + $0x180] sm:$0xff]  }
 0x470   : > { %v2222_v37 = vsel %vm2179_vm3, %v2135_v14, %v2221_v36  ;;  %v2217_v61 = vsel %vm2183_vm5, %v2093_v12, %v2216_v50 }
 0x471   : > { %v2153_v38 = vrot.slane %v2152_v24, 2  ;;  %v2145_v31 = vmax.f32 %v2143_v40, %v2144_v25  ;;  %v2223_v56 = vsel %vm2181_vm4, %v2142_v54, %v2222_v37  ;;  %v2218_v62 = vsel %vm2185_vm6, %v2100_v7, %v2217_v61 }
 0x472   : > { %3218 = vmatpush3.bf16.msra.mxu1 %v3352_v4 }
 0x473   : > { %v2154_v17 = vmax.f32 %v2152_v24, %v2153_v38  ;;  %v2146_v53 = vrot.slane %v2145_v31, 2 }
 0x475   : > { %v2147_v35 = vmax.f32 %v2145_v31, %v2146_v53  ;;  %v2155_v60 = vrot.slane %v2154_v17, 1 }
 0x477   : > { %v2148_v19 = vrot.slane %v2147_v35, 1  ;;  %v2156_v39 = vmax.f32 %v2154_v17, %v2155_v60 }
 0x479   : > { %v2149_v48 = vmax.f32 %v2147_v35, %v2148_v19 }
 0x47b   : > { %v2224_v55 = vsel %vm2183_vm5, %v2149_v48, %v2223_v56 }
 0x47c   : > { %v2225_v63 = vsel %vm2185_vm6, %v2156_v39, %v2224_v55 }
 0x47d   : > { %v2229_v44 = vpack.c.bf16 %v2225_v63, %v2218_v62 }
 0x47f   : > { %2362 = vmatprep.mubr.bf16.mxu0 %v2229_v44 }
 0x480   : > { %2363 = vmatmul.mubr.bf16.vlgmr.msra.gmra.mxu0 %v4150_v34 }
 0x540   : > { %v2996_v43 = vpop.f32.mrf.mxu0 }
 0x542   : > { %v2997_v10 = vpop.f32.mrf.mxu0 }
 0x543   : > { %v2998_v0 = vadd.f32 %v2997_v10, %v2996_v43 }
 0x544   : > { %v2999_v13 = vpop.f32.mrf.mxu0 }
 0x545   : > { %v2365_v2 = vadd.f32 %v2998_v0, %v2629_v57 }
 0x546   : > { %v3000_v45 = vpop.f32.mrf.mxu0 }
 0x547   : > { %v3001_v52 = vadd.f32 %v3000_v45, %v2999_v13  ;;  %v2371_v49 = vmax.f32 %v2365_v2, 0.0 }
 0x549   : > { %v2368_v40 = vadd.f32 %v3001_v52, %v2629_v57 }
 0x54b   : > { %v2372_v6 = vmax.f32 %v2368_v40, 0.0 }
 0x54d   : > { %v2373_v41 = vpack.c.bf16 %v2372_v6, %v2371_v49 }
 0x54f   : > { %3220 = vmatmul.mubr.bf16.vlgmr.msra.gmra.mxu1 %v2373_v41 }
 0x60f   : > { %v2460_v11 = vpop.f32.mrf.mxu1 }
 0x610   : > { %v2461_v22 = vadd.f32 %v2646_v20, %v2460_v11 }
 0x611   : > { %v3221_v24 = vpop.f32.mrf.mxu1 }
 0x612   : > { %2467 = vst [vmem:[%s217_s30] sm:$0xff] %v2461_v22 }
 0x613   : > { %v2463_v25 = vpop.f32.mrf.mxu1 }
 0x614   : > { %v2464_v8 = vadd.f32 %v2646_v20, %v2463_v25 }
 0x615   : > { %v3222_v28 = vpop.f32.mrf.mxu1 }
 0x616   : > { %2468 = vst [vmem:[%s217_s30 + $0x8] sm:$0xff] %v2464_v8 }
 0x617 PF: > { %s14_s15 = sadd.s32 1, %s3390_s15  }
 0x618   : > { %p11_p4 = scmp.ge.s32.totalorder %s14_s15, 6  }
 0x61a   :  { %13 = sbr.rel (!%p11_p4) target bundleno = 1 (0x1), region = 69 }

</bundles_post_ra>
